<compile_context>
chip_gen: v7x
topology: tpu7x:2x2x1
jax: 0.10.0
libtpu: 0.0.40
codegen_flags: <defaults>
</compile_context>

<pallas_src>
import jax
import jax.numpy as jnp
from jax import lax
from jax.experimental import pallas as pl
from jax.experimental.pallas import tpu as pltpu

EPS = 1e-5
NEG_BIG = -1e30  # fill for padded logit lanes (finite, avoids inf-inf NaNs)

# Logical / padded dimensions
IN, IN_P = 784, 896
H1, H1_P = 548, 640
H2, H2_P = 252, 256
OUT, OUT_P = 10, 128


def _round_up(n, m):
    return ((n + m - 1) // m) * m


# --------------------------------------------------------------------------
# Kernel: x @ W1 + b1 -> relu -> @ W2 + b2 -> relu -> @ W3 + b3 -> log_softmax
# (BatchNorm already folded into W1/b1 and W2/b2; dropout is identity in eval)
# --------------------------------------------------------------------------
def _mlp_kernel(x_ref, w1_ref, b1_ref, w2_ref, b2_ref, w3_ref, b3_ref, o_ref):
    x = x_ref[...]                                              # (TB, 896) f32

    h = jnp.dot(x.astype(jnp.bfloat16), w1_ref[...],
                preferred_element_type=jnp.float32) + b1_ref[...]
    h = jnp.maximum(h, 0.0)                                     # (TB, 640)

    h = jnp.dot(h.astype(jnp.bfloat16), w2_ref[...],
                preferred_element_type=jnp.float32) + b2_ref[...]
    h = jnp.maximum(h, 0.0)                                     # (TB, 256)

    logits = jnp.dot(h.astype(jnp.bfloat16), w3_ref[...],
                     preferred_element_type=jnp.float32) + b3_ref[...]
    # padded lanes carry bias -1e30 -> exp underflows to 0 in the reduction
    m = jnp.max(logits, axis=1, keepdims=True)
    shifted = logits - m
    lse = jnp.log(jnp.sum(jnp.exp(shifted), axis=1, keepdims=True))
    o_ref[...] = (shifted - lse).astype(o_ref.dtype)            # (TB, 128)


# --------------------------------------------------------------------------
# Parameter preparation: fold eval-mode BN, pad to 128-multiples, cast to bf16
# --------------------------------------------------------------------------
def prepare_params(raw):
    def fold_bn(w, b, g, beta, rm, rv):
        scale = g * lax.rsqrt(rv + EPS)          # (1, n)
        return w * scale, (b - rm) * scale + beta

    w1f, b1f = fold_bn(raw["w1"], raw["b1"], raw["g1"], raw["beta1"],
                       raw["rm1"], raw["rv1"])
    w2f, b2f = fold_bn(raw["w2"], raw["b2"], raw["g2"], raw["beta2"],
                       raw["rm2"], raw["rv2"])
    w3, b3 = raw["w3"], raw["b3"]

    def pad_w(w, rows, cols):
        out = jnp.zeros((rows, cols), jnp.float32)
        return out.at[:w.shape[0], :w.shape[1]].set(w)

    def pad_b(b, cols, fill=0.0):
        out = jnp.full((1, cols), fill, jnp.float32)
        return out.at[:, :b.shape[1]].set(b)

    return dict(
        w1=pad_w(w1f, IN_P, H1_P).astype(jnp.bfloat16),
        b1=pad_b(b1f, H1_P),
        w2=pad_w(w2f, H1_P, H2_P).astype(jnp.bfloat16),
        b2=pad_b(b2f, H2_P),
        w3=pad_w(w3, H2_P, OUT_P).astype(jnp.bfloat16),
        b3=pad_b(b3, OUT_P, fill=NEG_BIG),
    )


# --------------------------------------------------------------------------
# Wrapper: flatten NCHW input, pad batch/features, launch batch-tiled kernel
# --------------------------------------------------------------------------
def mnist_mlp_forward(x_nchw, prepped):
    """x_nchw: (B, 1, 28, 28) float32.  Returns (B, 10) log-probabilities."""
    B = x_nchw.shape[0]
    x = x_nchw.reshape(B, IN).astype(jnp.float32)

    TB = min(256, _round_up(B, 8))          # batch tile (multiple of 8)
    B_pad = _round_up(B, TB)

    x_p = jnp.zeros((B_pad, IN_P), jnp.float32).at[:B, :IN].set(x)

    grid = (B_pad // TB,)
    full = lambda shape: pl.BlockSpec(shape, lambda i: (0, 0))

    out = pl.pallas_call(
        _mlp_kernel,
        out_shape=jax.ShapeDtypeStruct((B_pad, OUT_P), jnp.float32),
        grid=grid,
        in_specs=[
            pl.BlockSpec((TB, IN_P), lambda i: (i, 0)),   # x tile
            full((IN_P, H1_P)), full((1, H1_P)),          # W1', b1'
            full((H1_P, H2_P)), full((1, H2_P)),          # W2', b2'
            full((H2_P, OUT_P)), full((1, OUT_P)),        # W3, b3 (padded)
        ],
        out_specs=pl.BlockSpec((TB, OUT_P), lambda i: (i, 0)),
        compiler_params=pltpu.CompilerParams(
            dimension_semantics=("parallel",)),
    )(x_p, prepped["w1"], prepped["b1"], prepped["w2"], prepped["b2"],
      prepped["w3"], prepped["b3"])

    return out[:B, :OUT]


# --------------------------------------------------------------------------
# Deterministic synthetic parameters matching the PyTorch module shapes
# (weights stored (in, out) = transpose of PyTorch's (out, in))
# --------------------------------------------------------------------------
def init_params(key):
    ks = jax.random.split(key, 6)

    def linear(kw, kb, fan_in, fan_out):
        bound = 1.0 / jnp.sqrt(fan_in)
        w = jax.random.uniform(kw, (fan_in, fan_out), jnp.float32, -bound, bound)
        b = jax.random.uniform(kb, (1, fan_out), jnp.float32, -bound, bound)
        return w, b

    w1, b1 = linear(ks[0], ks[1], IN, H1)
    w2, b2 = linear(ks[2], ks[3], H1, H2)
    w3, b3 = linear(ks[4], ks[5], H2, OUT)

    return dict(
        w1=w1, b1=b1,
        g1=jnp.ones((1, H1), jnp.float32), beta1=jnp.zeros((1, H1), jnp.float32),
        rm1=jnp.zeros((1, H1), jnp.float32), rv1=jnp.ones((1, H1), jnp.float32),
        w2=w2, b2=b2,
        g2=jnp.ones((1, H2), jnp.float32), beta2=jnp.zeros((1, H2), jnp.float32),
        rm2=jnp.zeros((1, H2), jnp.float32), rv2=jnp.ones((1, H2), jnp.float32),
        w3=w3, b3=b3,
    )


if __name__ == "__main__":
    key = jax.random.PRNGKey(0)
    kx, kp = jax.random.split(key)

    B = 8
    x = jax.random.normal(kx, (B, 1, 28, 28), jnp.float32)   # NCHW like PyTorch
    raw_params = init_params(kp)
    prepped = prepare_params(raw_params)

    out = mnist_mlp_forward(x, prepped)
    out = jax.block_until_ready(out)

    assert out.shape == (B, OUT)
    # log_softmax rows should sum (in prob space) to 1
    assert jnp.allclose(jnp.sum(jnp.exp(out), axis=1), 1.0, atol=1e-4)
    print("KERNEL_OK")
</pallas_src>

<mosaic_0001>
module attributes {stable_mosaic.version = 11 : i64} {
  func.func @_mlp_kernel(%arg0: i32, %arg1: memref<8x896xf32, #tpu.memory_space<vmem>>, %arg2: memref<896x640xbf16, #tpu.memory_space<vmem>>, %arg3: memref<1x640xf32, #tpu.memory_space<vmem>>, %arg4: memref<640x256xbf16, #tpu.memory_space<vmem>>, %arg5: memref<1x256xf32, #tpu.memory_space<vmem>>, %arg6: memref<256x128xbf16, #tpu.memory_space<vmem>>, %arg7: memref<1x128xf32, #tpu.memory_space<vmem>>, %arg8: memref<8x128xf32, #tpu.memory_space<vmem>>) attributes {dimension_semantics = [#tpu.dimension_semantics<parallel>], iteration_bounds = array<i64: 1>, scalar_prefetch = 0 : i64, scratch_operands = 0 : i64, tpu.core_type = #tpu.core_type<tc>, window_params = [{transform_indices = @transform_0, window_bounds = array<i64: 8, 896>}, {pipeline_mode = #tpu.pipeline_mode<synchronous>, transform_indices = @transform_1, window_bounds = array<i64: 896, 640>}, {pipeline_mode = #tpu.pipeline_mode<synchronous>, transform_indices = @transform_2, window_bounds = array<i64: 1, 640>}, {pipeline_mode = #tpu.pipeline_mode<synchronous>, transform_indices = @transform_3, window_bounds = array<i64: 640, 256>}, {pipeline_mode = #tpu.pipeline_mode<synchronous>, transform_indices = @transform_4, window_bounds = array<i64: 1, 256>}, {pipeline_mode = #tpu.pipeline_mode<synchronous>, transform_indices = @transform_5, window_bounds = array<i64: 256, 128>}, {pipeline_mode = #tpu.pipeline_mode<synchronous>, transform_indices = @transform_6, window_bounds = array<i64: 1, 128>}, {transform_indices = @transform_7, window_bounds = array<i64: 8, 128>}]} {
    %c0 = arith.constant 0 : index
    %c0_0 = arith.constant 0 : index
    %0 = vector.load %arg1[%c0, %c0_0] : memref<8x896xf32, #tpu.memory_space<vmem>>, vector<8x896xf32>
    %1 = arith.truncf %0 : vector<8x896xf32> to vector<8x896xbf16>
    %c0_1 = arith.constant 0 : index
    %c0_2 = arith.constant 0 : index
    %2 = vector.load %arg2[%c0_1, %c0_2] : memref<896x640xbf16, #tpu.memory_space<vmem>>, vector<896x640xbf16>
    %cst = arith.constant dense<0.000000e+00> : vector<8x640xf32>
    %3 = tpu.matmul %1, %2, %cst {dimension_numbers = #tpu.dot_dimension_numbers<[1], [0], [0], [1], [0, 0, 1, 1], [], []>} : vector<8x896xbf16>, vector<896x640xbf16>, vector<8x640xf32> -> vector<8x640xf32>
    %c0_3 = arith.constant 0 : index
    %c0_4 = arith.constant 0 : index
    %4 = vector.load %arg3[%c0_3, %c0_4] : memref<1x640xf32, #tpu.memory_space<vmem>>, vector<1x640xf32>
    %5 = vector.broadcast %4 : vector<1x640xf32> to vector<8x640xf32>
    %6 = arith.addf %3, %5 : vector<8x640xf32>
    %cst_5 = arith.constant 0.000000e+00 : f32
    %7 = vector.broadcast %cst_5 : f32 to vector<8x640xf32>
    %8 = arith.maximumf %6, %7 : vector<8x640xf32>
    %9 = arith.truncf %8 : vector<8x640xf32> to vector<8x640xbf16>
    %c0_6 = arith.constant 0 : index
    %c0_7 = arith.constant 0 : index
    %10 = vector.load %arg4[%c0_6, %c0_7] : memref<640x256xbf16, #tpu.memory_space<vmem>>, vector<640x256xbf16>
    %cst_8 = arith.constant dense<0.000000e+00> : vector<8x256xf32>
    %11 = tpu.matmul %9, %10, %cst_8 {dimension_numbers = #tpu.dot_dimension_numbers<[1], [0], [0], [1], [0, 0, 1, 1], [], []>} : vector<8x640xbf16>, vector<640x256xbf16>, vector<8x256xf32> -> vector<8x256xf32>
    %c0_9 = arith.constant 0 : index
    %c0_10 = arith.constant 0 : index
    %12 = vector.load %arg5[%c0_9, %c0_10] : memref<1x256xf32, #tpu.memory_space<vmem>>, vector<1x256xf32>
    %13 = vector.broadcast %12 : vector<1x256xf32> to vector<8x256xf32>
    %14 = arith.addf %11, %13 : vector<8x256xf32>
    %cst_11 = arith.constant 0.000000e+00 : f32
    %15 = vector.broadcast %cst_11 : f32 to vector<8x256xf32>
    %16 = arith.maximumf %14, %15 : vector<8x256xf32>
    %17 = arith.truncf %16 : vector<8x256xf32> to vector<8x256xbf16>
    %c0_12 = arith.constant 0 : index
    %c0_13 = arith.constant 0 : index
    %18 = vector.load %arg6[%c0_12, %c0_13] : memref<256x128xbf16, #tpu.memory_space<vmem>>, vector<256x128xbf16>
    %cst_14 = arith.constant dense<0.000000e+00> : vector<8x128xf32>
    %19 = tpu.matmul %17, %18, %cst_14 {dimension_numbers = #tpu.dot_dimension_numbers<[1], [0], [0], [1], [0, 0, 1, 1], [], []>} : vector<8x256xbf16>, vector<256x128xbf16>, vector<8x128xf32> -> vector<8x128xf32>
    %c0_15 = arith.constant 0 : index
    %c0_16 = arith.constant 0 : index
    %20 = vector.load %arg7[%c0_15, %c0_16] : memref<1x128xf32, #tpu.memory_space<vmem>>, vector<1x128xf32>
    %21 = vector.broadcast %20 : vector<1x128xf32> to vector<8x128xf32>
    %22 = arith.addf %19, %21 : vector<8x128xf32>
    %cst_17 = arith.constant dense<0xFF800000> : vector<8xf32>
    %23 = vector.multi_reduction <maximumf>, %22, %cst_17 [1] : vector<8x128xf32> to vector<8xf32>
    %24 = vector.shape_cast %23 : vector<8xf32> to vector<8x1xf32>
    %25 = vector.broadcast %24 : vector<8x1xf32> to vector<8x128xf32>
    %26 = arith.subf %22, %25 : vector<8x128xf32>
    %27 = math.exp %26 : vector<8x128xf32>
    %cst_18 = arith.constant dense<0.000000e+00> : vector<8xf32>
    %28 = vector.multi_reduction <add>, %27, %cst_18 [1] : vector<8x128xf32> to vector<8xf32>
    %29 = vector.shape_cast %28 : vector<8xf32> to vector<8x1xf32>
    %30 = math.log %29 : vector<8x1xf32>
    %31 = vector.broadcast %30 : vector<8x1xf32> to vector<8x128xf32>
    %32 = arith.subf %26, %31 : vector<8x128xf32>
    %c0_19 = arith.constant 0 : index
    %c0_20 = arith.constant 0 : index
    %33 = vector.load %arg8[%c0_19, %c0_20] : memref<8x128xf32, #tpu.memory_space<vmem>>, vector<8x128xf32>
    tpu.vector_store %arg8[%c0_19, %c0_20], %32 {strides = array<i32>} : memref<8x128xf32, #tpu.memory_space<vmem>>, vector<8x128xf32>,
    return
  }
  func.func @transform_0(%arg0: i32) -> (i32, i32) {
    %c0_i32 = arith.constant 0 : i32
    %c0_i32_0 = arith.constant 0 : i32
    return %arg0, %c0_i32 : i32, i32
  }
  func.func @transform_1(%arg0: i32) -> (i32, i32) {
    %c0_i32 = arith.constant 0 : i32
    %c0_i32_0 = arith.constant 0 : i32
    %c0_i32_1 = arith.constant 0 : i32
    return %c0_i32, %c0_i32_0 : i32, i32
  }
  func.func @transform_2(%arg0: i32) -> (i32, i32) {
    %c0_i32 = arith.constant 0 : i32
    %c0_i32_0 = arith.constant 0 : i32
    %c0_i32_1 = arith.constant 0 : i32
    return %c0_i32, %c0_i32_0 : i32, i32
  }
  func.func @transform_3(%arg0: i32) -> (i32, i32) {
    %c0_i32 = arith.constant 0 : i32
    %c0_i32_0 = arith.constant 0 : i32
    %c0_i32_1 = arith.constant 0 : i32
    return %c0_i32, %c0_i32_0 : i32, i32
  }
  func.func @transform_4(%arg0: i32) -> (i32, i32) {
    %c0_i32 = arith.constant 0 : i32
    %c0_i32_0 = arith.constant 0 : i32
    %c0_i32_1 = arith.constant 0 : i32
    return %c0_i32, %c0_i32_0 : i32, i32
  }
  func.func @transform_5(%arg0: i32) -> (i32, i32) {
    %c0_i32 = arith.constant 0 : i32
    %c0_i32_0 = arith.constant 0 : i32
    %c0_i32_1 = arith.constant 0 : i32
    return %c0_i32, %c0_i32_0 : i32, i32
  }
  func.func @transform_6(%arg0: i32) -> (i32, i32) {
    %c0_i32 = arith.constant 0 : i32
    %c0_i32_0 = arith.constant 0 : i32
    %c0_i32_1 = arith.constant 0 : i32
    return %c0_i32, %c0_i32_0 : i32, i32
  }
  func.func @transform_7(%arg0: i32) -> (i32, i32) {
    %c0_i32 = arith.constant 0 : i32
    %c0_i32_0 = arith.constant 0 : i32
    return %arg0, %c0_i32 : i32, i32
  }
}

</mosaic_0001>

<bundles_post_ra>
// kernel: tpu_custom_call.1
= control target key start
LH: loop header
LB: loop body
LE: loop exit
PB: predicated region body
PF: predicated region fallthrough
CT: control target
= control target key end

     0   :  { %12 = vsyncpa [#allocation3], 0  ;;  %s4759_s0 = inlined_call_operand.hbm [shape: f32[8,896], index: 0, kind: input, shape index: {}]   ;;  %s4760_s1 = inlined_call_operand.hbm [shape: bf16[896,640], index: 1, kind: input, shape index: {}]   ;;  %s4761_s2 = inlined_call_operand.hbm [shape: f32[1,640], index: 2, kind: input, shape index: {}]   ;;  %s4762_s3 = inlined_call_operand.hbm [shape: bf16[640,256], index: 3, kind: input, shape index: {}]   ;;  %s4763_s4 = inlined_call_operand.hbm [shape: f32[1,256], index: 4, kind: input, shape index: {}]   ;;  %s4764_s5 = inlined_call_operand.hbm [shape: bf16[256,128], index: 5, kind: input, shape index: {}]   ;;  %s4765_s6 = inlined_call_operand.hbm [shape: f32[1,128], index: 6, kind: input, shape index: {}]   ;;  %s4766_s7 = inlined_call_operand.hbm [shape: f32[8,128], index: 7, kind: output, shape index: {}]  }
   0x1   :  { %13 = vsyncpa [#allocation6], 0 }
   0x2   :  { %14 = vsyncpa [#allocation9], 0 }
   0x3   :  { %15 = vsyncpa [#allocation12], 0 }
   0x4   :  { %16 = vsyncpa [#allocation4], 0  ;;  %s4534_s24 = smov [#allocation5]   ;;  %s4348_s28 = scalar_lea.hbm %s4760_s1, 35840 }
   0x5   :  { %s32_s25 = sshll.u32 %s4534_s24, 4  ;;  %p4349_p0 = scmp.ne.s32.totalorder %s4760_s1, %s4348_s28  ;;  %s33_s25 = int_to_ptr.vmem [resolvable:$true] %s32_s25 }
   0x6   :  { %p4352_p1 = scmp.lt.u32.totalorder %s4348_s28, %s4760_s1 }
   0x8   :  { %p4354_p2 = pnand %p4352_p1, %p4349_p0 }
   0xa   :  { %4357 = shalt.err (!%p4354_p2)
}
   0xb   :  { %s4358_s10 = scalar_lea.vmem %s33_s25, 35840  ;;  %p4363_p4 = scmp.lt.s32.totalorder %s33_s25, %s33_s25 }
   0xc   :  { %p4359_p3 = scmp.ne.s32.totalorder %s33_s25, %s4358_s10  ;;  %p4364_p5 = scmp.lt.s32.totalorder %s4358_s10, %s4358_s10 }
   0xe   :  { %p4365_p6 = por %p4364_p5, %p4363_p4 }
  0x10   :  { %p4366_p7 = pnand %p4365_p6, %p4359_p3 }
  0x12   :  { %4369 = shalt.err (!%p4366_p7)
}
  0x13   :  { %s4535_s11 = smov 320   ;;  %s4536_s12 = smov 20  }
  0x14   :  { %38 = dma.hbm_to_vmem [thread:$0]  %s4760_s1, 35840, %s33_s25, [#allocation6], %s4535_s11, %s4535_s11, %s4536_s12  }
  0x15   :  { %s4537_s15 = smov [#allocation8]   ;;  %s4370_s19 = scalar_lea.hbm %s4762_s3, 10240 }
  0x16   :  { %s54_s16 = sshll.u32 %s4537_s15, 4  ;;  %p4371_p8 = scmp.ne.s32.totalorder %s4762_s3, %s4370_s19  ;;  %s55_s16 = int_to_ptr.vmem [resolvable:$true] %s54_s16 }
  0x17   :  { %p4374_p9 = scmp.lt.u32.totalorder %s4370_s19, %s4762_s3 }
  0x19   :  { %p4376_p10 = pnand %p4374_p9, %p4371_p8 }
  0x1b   :  { %4379 = shalt.err (!%p4376_p10)
}
  0x1c   :  { %s4380_s24 = scalar_lea.vmem %s55_s16, 10240  ;;  %p4385_p12 = scmp.lt.s32.totalorder %s55_s16, %s55_s16 }
  0x1d   :  { %p4381_p11 = scmp.ne.s32.totalorder %s55_s16, %s4380_s24  ;;  %p4386_p13 = scmp.lt.s32.totalorder %s4380_s24, %s4380_s24 }
  0x1f   :  { %p4387_p0 = por %p4386_p13, %p4385_p12 }
  0x21   :  { %p4388_p1 = pnand %p4387_p0, %p4381_p11 }
  0x23   :  { %4391 = shalt.err (!%p4388_p1)
}
  0x24   :  { %s4538_s1 = smov 128   ;;  %s4539_s25 = smov 8  }
  0x25   :  { %60 = dma.hbm_to_vmem [thread:$0]  %s4762_s3, 10240, %s55_s16, [#allocation9], %s4538_s1, %s4538_s1, %s4539_s25  }
  0x26   :  { %s4540_s28 = smov [#allocation11]   ;;  %s4392_s9 = scalar_lea.hbm %s4764_s5, 2048 }
  0x27   :  { %s76_s29 = sshll.u32 %s4540_s28, 4  ;;  %p4393_p2 = scmp.ne.s32.totalorder %s4764_s5, %s4392_s9  ;;  %s77_s29 = int_to_ptr.vmem [resolvable:$true] %s76_s29 }
  0x28   :  { %p4396_p3 = scmp.lt.u32.totalorder %s4392_s9, %s4764_s5 }
  0x2a   :  { %p4398_p4 = pnand %p4396_p3, %p4393_p2 }
  0x2c   :  { %4401 = shalt.err (!%p4398_p4)
}
  0x2d   :  { %s4402_s14 = scalar_lea.vmem %s77_s29, 2048  ;;  %p4407_p6 = scmp.lt.s32.totalorder %s77_s29, %s77_s29 }
  0x2e   :  { %p4403_p5 = scmp.ne.s32.totalorder %s77_s29, %s4402_s14  ;;  %p4408_p7 = scmp.lt.s32.totalorder %s4402_s14, %s4402_s14 }
  0x30   :  { %p4409_p8 = por %p4408_p7, %p4407_p6 }
  0x32   :  { %p4410_p9 = pnand %p4409_p8, %p4403_p5 }
  0x34   :  { %4413 = shalt.err (!%p4410_p9)
}
  0x35   :  { %s4541_s3 = smov 64   ;;  %s4542_s15 = smov 4  }
  0x36   :  { %82 = dma.hbm_to_vmem [thread:$0]  %s4764_s5, 2048, %s77_s29, [#allocation12], %s4541_s3, %s4541_s3, %s4542_s15  }
  0x37   :  { %s4543_s18 = smov [#allocation2]   ;;  %s4544_s20 = smov [#allocation7]  }
  0x38   :  { %s23_s19 = sshll.u32 %s4543_s18, 4  ;;  %s45_s21 = sshll.u32 %s4544_s20, 4  ;;  %s24_s19 = int_to_ptr.vmem [resolvable:$true] %s23_s19  ;;  %s46_s21 = int_to_ptr.vmem [resolvable:$true] %s45_s21 }
  0x39   :  { %s4414_s24 = scalar_lea.hbm %s4759_s0, 896 }
  0x3a   :  { %p4415_p10 = scmp.ne.s32.totalorder %s4759_s0, %s4414_s24  ;;  %p4418_p11 = scmp.lt.u32.totalorder %s4414_s24, %s4759_s0 }
  0x3c   :  { %p4420_p12 = pnand %p4418_p11, %p4415_p10 }
  0x3e   :  { %4423 = shalt.err (!%p4420_p12)
}
  0x3f   :  { %s4424_s5 = scalar_lea.vmem %s24_s19, 896  ;;  %p4429_p0 = scmp.lt.s32.totalorder %s24_s19, %s24_s19 }
  0x40   :  { %p4425_p13 = scmp.ne.s32.totalorder %s24_s19, %s4424_s5  ;;  %p4430_p1 = scmp.lt.s32.totalorder %s4424_s5, %s4424_s5 }
  0x42   :  { %p4431_p2 = por %p4430_p1, %p4429_p0 }
  0x44   :  { %p4432_p3 = pnand %p4431_p2, %p4425_p13 }
  0x46   :  { %4435 = shalt.err (!%p4432_p3)
}
  0x47   :  { %26 = dma.hbm_to_vmem [thread:$0]  %s4759_s0, 896, %s24_s19, [#allocation3]  }
  0x48   :  { %s4436_s9 = scalar_lea.hbm %s4761_s2, 80 }
  0x49   :  { %p4437_p4 = scmp.ne.s32.totalorder %s4761_s2, %s4436_s9  ;;  %p4440_p5 = scmp.lt.u32.totalorder %s4436_s9, %s4761_s2 }
  0x4b   :  { %p4442_p6 = pnand %p4440_p5, %p4437_p4 }
  0x4d   :  { %4445 = shalt.err (!%p4442_p6)
}
  0x4e   :  { %s4446_s14 = scalar_lea.vmem %s46_s21, 80  ;;  %s4450_s3 = scalar_lea.vmem %s46_s21, 96 }
  0x4f   :  { %p4447_p7 = scmp.ne.s32.totalorder %s46_s21, %s4446_s14  ;;  %p4451_p8 = scmp.lt.s32.totalorder %s46_s21, %s46_s21 }
  0x50   :  { %p4452_p9 = scmp.lt.s32.totalorder %s4450_s3, %s4446_s14 }
  0x52   :  { %p4453_p10 = por %p4452_p9, %p4451_p8 }
  0x54   :  { %p4454_p11 = pnand %p4453_p10, %p4447_p7 }
  0x56   :  { %4457 = shalt.err (!%p4454_p11)
}
  0x57   :  { %48 = dma.hbm_to_vmem [thread:$0]  %s4761_s2, 80, %s46_s21, [#allocation6]  }
  0x58   :  { %s4545_s16 = smov [#allocation10]   ;;  %s4546_s18 = smov [#allocation13]  }
  0x59   :  { %s67_s17 = sshll.u32 %s4545_s16, 4  ;;  %s89_s19 = sshll.u32 %s4546_s18, 4  ;;  %s68_s17 = int_to_ptr.vmem [resolvable:$true] %s67_s17  ;;  %s90_s19 = int_to_ptr.vmem [resolvable:$true] %s89_s19 }
  0x5a   :  { %s4458_s23 = scalar_lea.hbm %s4763_s4, 32 }
  0x5b   :  { %p4459_p12 = scmp.ne.s32.totalorder %s4763_s4, %s4458_s23  ;;  %p4462_p13 = scmp.lt.u32.totalorder %s4458_s23, %s4763_s4 }
  0x5d   :  { %p4464_p0 = pnand %p4462_p13, %p4459_p12 }
  0x5f   :  { %4467 = shalt.err (!%p4464_p0)
}
  0x60   :  { %s4468_s2 = scalar_lea.vmem %s68_s17, 32  ;;  %p4473_p2 = scmp.lt.s32.totalorder %s68_s17, %s68_s17 }
  0x61   :  { %p4469_p1 = scmp.ne.s32.totalorder %s68_s17, %s4468_s2  ;;  %p4474_p3 = scmp.lt.s32.totalorder %s4468_s2, %s4468_s2 }
  0x63   :  { %p4475_p4 = por %p4474_p3, %p4473_p2 }
  0x65   :  { %p4476_p5 = pnand %p4475_p4, %p4469_p1 }
  0x67   :  { %4479 = shalt.err (!%p4476_p5)
}
  0x68   :  { %70 = dma.hbm_to_vmem [thread:$0]  %s4763_s4, 32, %s68_s17, [#allocation9]  }
  0x69   :  { %s4480_s29 = scalar_lea.hbm %s4765_s6, 16 }
  0x6a   :  { %p4481_p6 = scmp.ne.s32.totalorder %s4765_s6, %s4480_s29  ;;  %p4484_p7 = scmp.lt.u32.totalorder %s4480_s29, %s4765_s6 }
  0x6c   :  { %p4486_p8 = pnand %p4484_p7, %p4481_p6 }
  0x6e   :  { %4489 = shalt.err (!%p4486_p8)
}
  0x6f   :  { %s4490_s11 = scalar_lea.vmem %s90_s19, 16  ;;  %s4494_s12 = scalar_lea.vmem %s90_s19, 32 }
  0x70   :  { %p4491_p9 = scmp.ne.s32.totalorder %s90_s19, %s4490_s11  ;;  %p4495_p10 = scmp.lt.s32.totalorder %s90_s19, %s90_s19 }
  0x71   :  { %p4496_p11 = scmp.lt.s32.totalorder %s4494_s12, %s4490_s11 }
  0x73   :  { %p4497_p12 = por %p4496_p11, %p4495_p10 }
  0x75   :  { %p4498_p13 = pnand %p4497_p12, %p4491_p9 }
  0x77   :  { %4501 = shalt.err (!%p4498_p13)
}
  0x78   :  { %92 = dma.hbm_to_vmem [thread:$0]  %s4765_s6, 16, %s90_s19, [#allocation12]  }
  0x79   :  { %4524 = dma.done.wait [#allocation3], 896  }
  0x7a   :  { %4525 = vsyncadd [#allocation3], 4294966400 }
  0x7b   :  { %4526 = dma.done.wait [#allocation6], 35920  }
  0x7c   :  { %4527 = vsyncadd [#allocation6], 4294931376 }
  0x7d   :  { %4528 = dma.done.wait [#allocation9], 10272  }
  0x7e   :  { %4529 = vsyncadd [#allocation9], 4294957024 }
  0x7f   :  { %4530 = dma.done.wait [#allocation12], 2064  }
  0x80   :  { %4531 = vsyncadd [#allocation12], 4294965232  ;;  %v3816_v0 = vld [vmem:[#allocation5 + $0x4] ss:$20 sps:$4 sm:$0xff]   ;;  %v3820_v2 = vld [vmem:[#allocation5] ss:$20 sps:$4 sm:$0xff]  }
  0x81   :  { %v3818_v1 = vld [vmem:[#allocation5 + $0x284] ss:$20 sps:$4 sm:$0xff]   ;;  %1948 = vmatprep.subr.bf16.mxu1 %v3816_v0  ;;  %v3821_v3 = vld [vmem:[#allocation5 + $0x280] ss:$20 sps:$4 sm:$0xff]   ;;  %v3826_v6 = vld [vmem:[#allocation5 + $0x28] ss:$20 sps:$4 sm:$0xff]  }
  0x82   :  { %1989 = vmatprep.subr.bf16.mxu0 %v3818_v1  ;;  %v3822_v4 = vld [vmem:[#allocation5 + $0x2c] ss:$20 sps:$4 sm:$0xff]   ;;  %1949 = vmatpush1.bf16.msra.mxu1 %v3820_v2  ;;  %v3827_v7 = vld [vmem:[#allocation5 + $0x2a8] ss:$20 sps:$4 sm:$0xff]   ;;  %v3832_v10 = vld [vmem:[#allocation5 + $0x50] ss:$20 sps:$4 sm:$0xff]  }
  0x83   :  { %1990 = vmatpush1.bf16.msra.mxu0 %v3821_v3  ;;  %v3824_v5 = vld [vmem:[#allocation5 + $0x2ac] ss:$20 sps:$4 sm:$0xff]   ;;  %1950 = vmatprep.subr.bf16.mxu1 %v3822_v4  ;;  %v3828_v8 = vld [vmem:[#allocation5 + $0x54] ss:$20 sps:$4 sm:$0xff]   ;;  %v3833_v11 = vld [vmem:[#allocation5 + $0x2d0] ss:$20 sps:$4 sm:$0xff]  }
  0x84   :  { %1991 = vmatprep.subr.bf16.mxu0 %v3824_v5  ;;  %v3830_v9 = vld [vmem:[#allocation5 + $0x2d4] ss:$20 sps:$4 sm:$0xff]   ;;  %v3834_v12 = vld [vmem:[#allocation5 + $0x7c] ss:$20 sps:$4 sm:$0xff]   ;;  %v3838_v14 = vld [vmem:[#allocation5 + $0x78] ss:$20 sps:$4 sm:$0xff]  }
  0x85   :  { %v3836_v13 = vld [vmem:[#allocation5 + $0x2fc] ss:$20 sps:$4 sm:$0xff]   ;;  %v3839_v15 = vld [vmem:[#allocation5 + $0x2f8] ss:$20 sps:$4 sm:$0xff]   ;;  %v3844_v18 = vld [vmem:[#allocation5 + $0xa0] ss:$20 sps:$4 sm:$0xff]  }
  0x86   :  { %1951 = vmatpush1.bf16.msra.mxu1 %v3826_v6  ;;  %v3840_v16 = vld [vmem:[#allocation5 + $0xa4] ss:$20 sps:$4 sm:$0xff]   ;;  %v3845_v19 = vld [vmem:[#allocation5 + $0x320] ss:$20 sps:$4 sm:$0xff]   ;;  %v3850_v22 = vld [vmem:[#allocation5 + $0xc8] ss:$20 sps:$4 sm:$0xff]  }
  0x87   :  { %1992 = vmatpush1.bf16.msra.mxu0 %v3827_v7  ;;  %1952 = vmatprep.subr.bf16.mxu1 %v3828_v8  ;;  %v3842_v17 = vld [vmem:[#allocation5 + $0x324] ss:$20 sps:$4 sm:$0xff]   ;;  %v3846_v20 = vld [vmem:[#allocation5 + $0xcc] ss:$20 sps:$4 sm:$0xff]   ;;  %v3851_v23 = vld [vmem:[#allocation5 + $0x348] ss:$20 sps:$4 sm:$0xff]  }
  0x88   :  { %1993 = vmatprep.subr.bf16.mxu0 %v3830_v9  ;;  %v3848_v21 = vld [vmem:[#allocation5 + $0x34c] ss:$20 sps:$4 sm:$0xff]   ;;  %v3852_v24 = vld [vmem:[#allocation5 + $0xf4] ss:$20 sps:$4 sm:$0xff]   ;;  %v3856_v26 = vld [vmem:[#allocation5 + $0xf0] ss:$20 sps:$4 sm:$0xff]  }
  0x89   :  { %v3854_v25 = vld [vmem:[#allocation5 + $0x374] ss:$20 sps:$4 sm:$0xff]   ;;  %v3857_v27 = vld [vmem:[#allocation5 + $0x370] ss:$20 sps:$4 sm:$0xff]   ;;  %v3862_v30 = vld [vmem:[#allocation5 + $0x118] ss:$20 sps:$4 sm:$0xff]  }
  0x8a   :  { %1953 = vmatpush1.bf16.msra.mxu1 %v3832_v10  ;;  %v3858_v28 = vld [vmem:[#allocation5 + $0x11c] ss:$20 sps:$4 sm:$0xff]   ;;  %v3863_v31 = vld [vmem:[#allocation5 + $0x398] ss:$20 sps:$4 sm:$0xff]   ;;  %v3868_v34 = vld [vmem:[#allocation5 + $0x140] ss:$20 sps:$4 sm:$0xff]  }
  0x8b   :  { %1994 = vmatpush1.bf16.msra.mxu0 %v3833_v11  ;;  %1954 = vmatprep.subr.bf16.mxu1 %v3834_v12  ;;  %v3860_v29 = vld [vmem:[#allocation5 + $0x39c] ss:$20 sps:$4 sm:$0xff]   ;;  %v3864_v32 = vld [vmem:[#allocation5 + $0x144] ss:$20 sps:$4 sm:$0xff]   ;;  %v3869_v35 = vld [vmem:[#allocation5 + $0x3c0] ss:$20 sps:$4 sm:$0xff]  }
  0x8c   :  { %1995 = vmatprep.subr.bf16.mxu0 %v3836_v13  ;;  %v3866_v33 = vld [vmem:[#allocation5 + $0x3c4] ss:$20 sps:$4 sm:$0xff]   ;;  %v3870_v36 = vld [vmem:[#allocation5 + $0x16c] ss:$20 sps:$4 sm:$0xff]   ;;  %v3874_v38 = vld [vmem:[#allocation5 + $0x168] ss:$20 sps:$4 sm:$0xff]  }
  0x8d   :  { %v3872_v37 = vld [vmem:[#allocation5 + $0x3ec] ss:$20 sps:$4 sm:$0xff]   ;;  %v3875_v39 = vld [vmem:[#allocation5 + $0x3e8] ss:$20 sps:$4 sm:$0xff]   ;;  %v3880_v42 = vld [vmem:[#allocation5 + $0x190] ss:$20 sps:$4 sm:$0xff]  }
  0x8e   :  { %1955 = vmatpush1.bf16.msra.mxu1 %v3838_v14  ;;  %v3876_v40 = vld [vmem:[#allocation5 + $0x194] ss:$20 sps:$4 sm:$0xff]   ;;  %v3881_v43 = vld [vmem:[#allocation5 + $0x410] ss:$20 sps:$4 sm:$0xff]   ;;  %v3886_v47 = vld [vmem:[#allocation5 + $0x1b8] ss:$20 sps:$4 sm:$0xff]  }
  0x8f   :  { %1996 = vmatpush1.bf16.msra.mxu0 %v3839_v15  ;;  %1956 = vmatprep.subr.bf16.mxu1 %v3840_v16  ;;  %v3878_v41 = vld [vmem:[#allocation5 + $0x414] ss:$20 sps:$4 sm:$0xff]   ;;  %v3882_v44 = vld [vmem:[#allocation5 + $0x1bc] ss:$20 sps:$4 sm:$0xff]   ;;  %v118_v49 = vld [vmem:[#allocation2 + $0x18] sm:$0xff]  ;;  %vm4549_vm0 = vmmov 0  }
  0x90   :  { %1997 = vmatprep.subr.bf16.mxu0 %v3842_v17  ;;  %v3884_v45 = vld [vmem:[#allocation5 + $0x43c] ss:$20 sps:$4 sm:$0xff]   ;;  %v3887_v50 = vld [vmem:[#allocation5 + $0x438] ss:$20 sps:$4 sm:$0xff]   ;;  %v4677_v52 = vpack.c.bf16 %v118_v49, %v118_v49  ;;  %v3892_v54 = vld [vmem:[#allocation5 + $0x1e0] ss:$20 sps:$4 sm:$0xff]  }
  0x91   :  { %v116_v46 = vld [vmem:[#allocation2 + $0x8] sm:$0xff]  ;;  %v3888_v51 = vld [vmem:[#allocation5 + $0x1e4] ss:$20 sps:$4 sm:$0xff]   ;;  %v3894_v56 = vld [vmem:[#allocation5 + $0x20c] ss:$20 sps:$4 sm:$0xff]   ;;  %s4550_s6 = smov [#allocation14]  }
  0x92   :  { %1957 = vmatpush1.bf16.msra.mxu1 %v3844_v18  ;;  %v4675_v48 = vpack.c.bf16 %v116_v46, %v116_v46  ;;  %v3890_v53 = vld [vmem:[#allocation5 + $0x464] ss:$20 sps:$4 sm:$0xff]   ;;  %2021 = vmatprep.mubr.bf16.mxu0 %v4677_v52  ;;  %v3893_v55 = vld [vmem:[#allocation5 + $0x460] ss:$20 sps:$4 sm:$0xff]   ;;  %v3898_v58 = vld [vmem:[#allocation5 + $0x208] ss:$20 sps:$4 sm:$0xff]  }
  0x93   :  { %1998 = vmatpush1.bf16.msra.mxu0 %v3845_v19  ;;  %1958 = vmatprep.subr.bf16.mxu1 %v3846_v20  ;;  %v3896_v57 = vld [vmem:[#allocation5 + $0x48c] ss:$20 sps:$4 sm:$0xff]   ;;  %v3899_v59 = vld [vmem:[#allocation5 + $0x488] ss:$20 sps:$4 sm:$0xff]   ;;  %v3904_v62 = vld [vmem:[#allocation5 + $0x230] ss:$20 sps:$4 sm:$0xff]  }
  0x94   :  { %1999 = vmatprep.subr.bf16.mxu0 %v3848_v21  ;;  %1980 = vmatprep.mubr.bf16.mxu1 %v4675_v48  ;;  %v3900_v60 = vld [vmem:[#allocation5 + $0x234] ss:$20 sps:$4 sm:$0xff]   ;;  %v3905_v63 = vld [vmem:[#allocation5 + $0x4b0] ss:$20 sps:$4 sm:$0xff]   ;;  %v3910_v2 = vld [vmem:[#allocation5 + $0x258] ss:$20 sps:$4 sm:$0xff]  }
  0x95   :  { %v3902_v61 = vld [vmem:[#allocation5 + $0x4b4] ss:$20 sps:$4 sm:$0xff]   ;;  %v3906_v0 = vld [vmem:[#allocation5 + $0x25c] ss:$20 sps:$4 sm:$0xff]   ;;  %v3911_v3 = vld [vmem:[#allocation5 + $0x4d8] ss:$20 sps:$4 sm:$0xff]  }
  0x96   :  { %1959 = vmatpush1.bf16.msra.mxu1 %v3850_v22  ;;  %v3908_v1 = vld [vmem:[#allocation5 + $0x4dc] ss:$20 sps:$4 sm:$0xff]   ;;  %v115_v4 = vld [vmem:[#allocation2] sm:$0xff]  ;;  %v3914_v5 = vld [vmem:[#allocation5 + $0x504] ss:$20 sps:$4 sm:$0xff]   ;;  %s3257_s14 = sshll.u32 %s4550_s6, 4  ;;  %s3258_s14 = int_to_ptr.vmem [resolvable:$true] %s3257_s14 }
  0x97   :  { %2000 = vmatpush1.bf16.msra.mxu0 %v3851_v23  ;;  %1960 = vmatprep.subr.bf16.mxu1 %v3852_v24  ;;  %v117_v6 = vld [vmem:[#allocation2 + $0x10] sm:$0xff]  ;;  %v3917_v7 = vld [vmem:[#allocation5 + $0xc] ss:$20 sps:$4 sm:$0xff]   ;;  %v4681_v8 = vpack.c.bf16 %v115_v4, %v115_v4  ;;  %v3923_v13 = vld [vmem:[#allocation5 + $0x34] ss:$20 sps:$4 sm:$0xff]   ;;  %s4502_s3 = scalar_lea.vmem %s3258_s14, 128  ;;  %p4507_p1 = scmp.lt.s32.totalorder %s3258_s14, %s3258_s14 }
  0x98   :  { %2001 = vmatprep.subr.bf16.mxu0 %v3854_v25  ;;  %v3912_v9 = vld [vmem:[#allocation5 + $0x500] ss:$20 sps:$4 sm:$0xff]   ;;  %v3915_v10 = vld [vmem:[#allocation5 + $0x8] ss:$20 sps:$4 sm:$0xff]   ;;  %v4683_v11 = vpack.c.bf16 %v117_v6, %v117_v6  ;;  %v3921_v15 = vld [vmem:[#allocation5 + $0x30] ss:$20 sps:$4 sm:$0xff]   ;;  %p4503_p0 = scmp.ne.s32.totalorder %s3258_s14, %s4502_s3  ;;  %p4508_p2 = scmp.lt.s32.totalorder %s4502_s3, %s4502_s3 }
  0x99   :  { %v3920_v12 = vld [vmem:[#allocation5 + $0x52c] ss:$20 sps:$4 sm:$0xff]   ;;  %v3918_v14 = vld [vmem:[#allocation5 + $0x528] ss:$20 sps:$4 sm:$0xff]   ;;  %v3924_v18 = vld [vmem:[#allocation5 + $0x550] ss:$20 sps:$4 sm:$0xff]  }
  0x9a   :  { %1961 = vmatpush1.bf16.msra.mxu1 %v3856_v26  ;;  %v3926_v16 = vld [vmem:[#allocation5 + $0x554] ss:$20 sps:$4 sm:$0xff]   ;;  %v3929_v17 = vld [vmem:[#allocation5 + $0x5c] ss:$20 sps:$4 sm:$0xff]   ;;  %v3927_v19 = vld [vmem:[#allocation5 + $0x58] ss:$20 sps:$4 sm:$0xff]   ;;  %p4509_p3 = por %p4508_p2, %p4507_p1 }
  0x9b   :  { %2002 = vmatpush1.bf16.msra.mxu0 %v3857_v27  ;;  %1962 = vmatprep.subr.bf16.mxu1 %v3858_v28  ;;  %v3932_v20 = vld [vmem:[#allocation5 + $0x57c] ss:$20 sps:$4 sm:$0xff]   ;;  %v3935_v21 = vld [vmem:[#allocation5 + $0x84] ss:$20 sps:$4 sm:$0xff]   ;;  %v3933_v23 = vld [vmem:[#allocation5 + $0x80] ss:$20 sps:$4 sm:$0xff]  }
  0x9c   :  { %2003 = vmatprep.subr.bf16.mxu0 %v3860_v29  ;;  %v3930_v22 = vld [vmem:[#allocation5 + $0x578] ss:$20 sps:$4 sm:$0xff]   ;;  %v3936_v26 = vld [vmem:[#allocation5 + $0x5a0] ss:$20 sps:$4 sm:$0xff]   ;;  %v3939_v27 = vld [vmem:[#allocation5 + $0xa8] ss:$20 sps:$4 sm:$0xff]   ;;  %p4510_p4 = pnand %p4509_p3, %p4503_p0 }
  0x9d   :  { %v3938_v24 = vld [vmem:[#allocation5 + $0x5a4] ss:$20 sps:$4 sm:$0xff]   ;;  %v3941_v25 = vld [vmem:[#allocation5 + $0xac] ss:$20 sps:$4 sm:$0xff]   ;;  %v3947_v29 = vld [vmem:[#allocation5 + $0xd4] ss:$20 sps:$4 sm:$0xff]  }
  0x9e   :  { %1963 = vmatpush1.bf16.msra.mxu1 %v3862_v30  ;;  %v3944_v28 = vld [vmem:[#allocation5 + $0x5cc] ss:$20 sps:$4 sm:$0xff]   ;;  %v3942_v30 = vld [vmem:[#allocation5 + $0x5c8] ss:$20 sps:$4 sm:$0xff]   ;;  %v3996_v6 = vld [vmem:[#allocation5 + $0x730] ss:$20 sps:$4 sm:$0xff]  }
  0x9f   :  { %2004 = vmatpush1.bf16.msra.mxu0 %v3863_v31  ;;  %1964 = vmatprep.subr.bf16.mxu1 %v3864_v32  ;;  %v3945_v31 = vld [vmem:[#allocation5 + $0xd0] ss:$20 sps:$4 sm:$0xff]   ;;  %v3950_v32 = vld [vmem:[#allocation5 + $0x5f4] ss:$20 sps:$4 sm:$0xff]   ;;  %v3968_v46 = vld [vmem:[#allocation5 + $0x66c] ss:$20 sps:$4 sm:$0xff]  }
  0xa0   :  { %2005 = vmatprep.subr.bf16.mxu0 %v3866_v33  ;;  %v3953_v33 = vld [vmem:[#allocation5 + $0xfc] ss:$20 sps:$4 sm:$0xff]   ;;  %v3998_v4 = vld [vmem:[#allocation5 + $0x734] ss:$20 sps:$4 sm:$0xff]  }
  0xa1   :  { %v3966_v49 = vld [vmem:[#allocation5 + $0x668] ss:$20 sps:$4 sm:$0xff]  }
  0xa2   :  { %1965 = vmatpush1.bf16.msra.mxu1 %v3868_v34  ;;  %v120_v34 = vld [vmem:[#allocation2 + $0x28] sm:$0xff] }
  0xa3   :  { %2006 = vmatpush1.bf16.msra.mxu0 %v3869_v35  ;;  %1966 = vmatprep.subr.bf16.mxu1 %v3870_v36  ;;  %v3948_v35 = vld [vmem:[#allocation5 + $0x5f0] ss:$20 sps:$4 sm:$0xff]   ;;  %v4688_v36 = vpack.c.bf16 %v120_v34, %v120_v34  ;;  %v4037_v34 = vld [vmem:[#allocation5 + $0x32c] ss:$20 sps:$4 sm:$0xff]  }
  0xa4   :  { %2007 = vmatprep.subr.bf16.mxu0 %v3872_v37  ;;  %v3951_v37 = vld [vmem:[#allocation5 + $0xf8] ss:$20 sps:$4 sm:$0xff]  }
  0xa6   :  { %1967 = vmatpush1.bf16.msra.mxu1 %v3874_v38  ;;  %v3956_v38 = vld [vmem:[#allocation5 + $0x61c] ss:$20 sps:$4 sm:$0xff]  }
  0xa7   :  { %2008 = vmatpush1.bf16.msra.mxu0 %v3875_v39  ;;  %1968 = vmatprep.subr.bf16.mxu1 %v3876_v40  ;;  %v3959_v39 = vld [vmem:[#allocation5 + $0x124] ss:$20 sps:$4 sm:$0xff]  }
  0xa8   :  { %2009 = vmatprep.subr.bf16.mxu0 %v3878_v41  ;;  %v3954_v40 = vld [vmem:[#allocation5 + $0x618] ss:$20 sps:$4 sm:$0xff]   ;;  %v3957_v41 = vld [vmem:[#allocation5 + $0x120] ss:$20 sps:$4 sm:$0xff]  }
  0xaa   :  { %1969 = vmatpush1.bf16.msra.mxu1 %v3880_v42  ;;  %v3962_v42 = vld [vmem:[#allocation5 + $0x644] ss:$20 sps:$4 sm:$0xff]  }
  0xab   :  { %2010 = vmatpush1.bf16.msra.mxu0 %v3881_v43  ;;  %1970 = vmatprep.subr.bf16.mxu1 %v3882_v44  ;;  %v3965_v43 = vld [vmem:[#allocation5 + $0x14c] ss:$20 sps:$4 sm:$0xff]  }
  0xac   :  { %2011 = vmatprep.subr.bf16.mxu0 %v3884_v45  ;;  %v3960_v44 = vld [vmem:[#allocation5 + $0x640] ss:$20 sps:$4 sm:$0xff]   ;;  %v3963_v45 = vld [vmem:[#allocation5 + $0x148] ss:$20 sps:$4 sm:$0xff]  }
  0xae   :  { %1971 = vmatpush1.bf16.msra.mxu1 %v3886_v47  ;;  %v3971_v47 = vld [vmem:[#allocation5 + $0x174] ss:$20 sps:$4 sm:$0xff]  }
  0xaf   :  { %2012 = vmatpush1.bf16.msra.mxu0 %v3887_v50  ;;  %1972 = vmatprep.subr.bf16.mxu1 %v3888_v51  ;;  %v3969_v50 = vld [vmem:[#allocation5 + $0x170] ss:$20 sps:$4 sm:$0xff]   ;;  %v3974_v51 = vld [vmem:[#allocation5 + $0x694] ss:$20 sps:$4 sm:$0xff]  }
  0xb0   :  { %2013 = vmatprep.subr.bf16.mxu0 %v3890_v53  ;;  %v3977_v53 = vld [vmem:[#allocation5 + $0x19c] ss:$20 sps:$4 sm:$0xff]  }
  0xb2   :  { %1973 = vmatpush1.bf16.msra.mxu1 %v3892_v54  ;;  %v3972_v54 = vld [vmem:[#allocation5 + $0x690] ss:$20 sps:$4 sm:$0xff]  }
  0xb3   :  { %2014 = vmatpush1.bf16.msra.mxu0 %v3893_v55  ;;  %1974 = vmatprep.subr.bf16.mxu1 %v3894_v56  ;;  %v3975_v55 = vld [vmem:[#allocation5 + $0x198] ss:$20 sps:$4 sm:$0xff]   ;;  %v3980_v56 = vld [vmem:[#allocation5 + $0x6bc] ss:$20 sps:$4 sm:$0xff]  }
  0xb4   :  { %2015 = vmatprep.subr.bf16.mxu0 %v3896_v57  ;;  %v3983_v57 = vld [vmem:[#allocation5 + $0x1c4] ss:$20 sps:$4 sm:$0xff]  }
  0xb6   :  { %1975 = vmatpush1.bf16.msra.mxu1 %v3898_v58  ;;  %v3978_v58 = vld [vmem:[#allocation5 + $0x6b8] ss:$20 sps:$4 sm:$0xff]  }
  0xb7   :  { %2016 = vmatpush1.bf16.msra.mxu0 %v3899_v59  ;;  %1976 = vmatprep.subr.bf16.mxu1 %v3900_v60  ;;  %v3981_v59 = vld [vmem:[#allocation5 + $0x1c0] ss:$20 sps:$4 sm:$0xff]   ;;  %v3986_v60 = vld [vmem:[#allocation5 + $0x6e4] ss:$20 sps:$4 sm:$0xff]  }
  0xb8   :  { %2017 = vmatprep.subr.bf16.mxu0 %v3902_v61  ;;  %v3989_v61 = vld [vmem:[#allocation5 + $0x1ec] ss:$20 sps:$4 sm:$0xff]  }
  0xba   :  { %1977 = vmatpush1.bf16.msra.mxu1 %v3904_v62  ;;  %v3984_v62 = vld [vmem:[#allocation5 + $0x6e0] ss:$20 sps:$4 sm:$0xff]  }
  0xbb   :  { %2018 = vmatpush1.bf16.msra.mxu0 %v3905_v63  ;;  %1978 = vmatprep.subr.bf16.mxu1 %v3906_v0  ;;  %v3987_v63 = vld [vmem:[#allocation5 + $0x1e8] ss:$20 sps:$4 sm:$0xff]   ;;  %v3992_v0 = vld [vmem:[#allocation5 + $0x70c] ss:$20 sps:$4 sm:$0xff]  }
  0xbc   :  { %2019 = vmatprep.subr.bf16.mxu0 %v3908_v1  ;;  %v3995_v1 = vld [vmem:[#allocation5 + $0x214] ss:$20 sps:$4 sm:$0xff]  }
  0xbe   :  { %1979 = vmatpush1.bf16.msra.mxu1 %v3910_v2  ;;  %v3990_v2 = vld [vmem:[#allocation5 + $0x708] ss:$20 sps:$4 sm:$0xff]  }
  0xbf   :  { %2020 = vmatpush1.bf16.msra.mxu0 %v3911_v3  ;;  %2112 = vmatprep.subr.bf16.mxu1 %v3917_v7  ;;  %v3993_v3 = vld [vmem:[#allocation5 + $0x210] ss:$20 sps:$4 sm:$0xff]   ;;  %v3999_v7 = vld [vmem:[#allocation5 + $0x238] ss:$20 sps:$4 sm:$0xff]  }
  0xc0   :  { %2030 = vmatprep.subr.bf16.mxu0 %v3914_v5  ;;  %v4001_v5 = vld [vmem:[#allocation5 + $0x23c] ss:$20 sps:$4 sm:$0xff]  }
  0xc1   :  { %1981 = vmatmul.mubr.bf16.vlgmr.msra.gmra.mrb[0].mxu1 %v4681_v8 }
  0xc2   :  { %2022 = vmatmul.mubr.bf16.vlgmr.msra.gmra.mrb[0].mxu0 %v4683_v11  ;;  %2113 = vmatpush1.bf16.msra.mxu1 %v3915_v10  ;;  %v4007_v10 = vld [vmem:[#allocation5 + $0x264] ss:$20 sps:$4 sm:$0xff]  }
  0xc3   :  { %2031 = vmatpush1.bf16.msra.mxu0 %v3912_v9  ;;  %2114 = vmatprep.subr.bf16.mxu1 %v3923_v13  ;;  %v4004_v9 = vld [vmem:[#allocation5 + $0x75c] ss:$20 sps:$4 sm:$0xff]   ;;  %v4005_v13 = vld [vmem:[#allocation5 + $0x260] ss:$20 sps:$4 sm:$0xff]  }
  0xc4   :  { %2032 = vmatprep.subr.bf16.mxu0 %v3920_v12  ;;  %2144 = vmatprep.mubr.bf16.mxu1 %v4675_v48  ;;  %v4002_v12 = vld [vmem:[#allocation5 + $0x758] ss:$20 sps:$4 sm:$0xff]  }
  0xc5   :  { %2062 = vmatprep.mubr.bf16.mxu0 %v4688_v36 }
  0xc6   :  { %2115 = vmatpush1.bf16.msra.mxu1 %v3921_v15  ;;  %v119_v15 = vld [vmem:[#allocation2 + $0x20] sm:$0xff] }
  0xc7   :  { %2033 = vmatpush1.bf16.msra.mxu0 %v3918_v14  ;;  %2116 = vmatprep.subr.bf16.mxu1 %v3929_v17  ;;  %v4010_v14 = vld [vmem:[#allocation5 + $0x784] ss:$20 sps:$4 sm:$0xff]   ;;  %v4008_v17 = vld [vmem:[#allocation5 + $0x780] ss:$20 sps:$4 sm:$0xff]  }
  0xc8   :  { %2034 = vmatprep.subr.bf16.mxu0 %v3926_v16  ;;  %v4013_v16 = vld [vmem:[#allocation5 + $0x28c] ss:$20 sps:$4 sm:$0xff]  }
  0xca   :  { %2117 = vmatpush1.bf16.msra.mxu1 %v3927_v19  ;;  %v4011_v19 = vld [vmem:[#allocation5 + $0x288] ss:$20 sps:$4 sm:$0xff]  }
  0xcb   :  { %2035 = vmatpush1.bf16.msra.mxu0 %v3924_v18  ;;  %2118 = vmatprep.subr.bf16.mxu1 %v3935_v21  ;;  %v4691_v18 = vpack.c.bf16 %v119_v15, %v119_v15  ;;  %v4019_v21 = vld [vmem:[#allocation5 + $0x2b4] ss:$20 sps:$4 sm:$0xff]   ;;  %v4154_v15 = vld [vmem:[#allocation5 + $0xd8] ss:$20 sps:$4 sm:$0xff]  }
  0xcc   :  { %2036 = vmatprep.subr.bf16.mxu0 %v3932_v20  ;;  %v4016_v20 = vld [vmem:[#allocation5 + $0x7ac] ss:$20 sps:$4 sm:$0xff]  }
  0xce   :  { %2119 = vmatpush1.bf16.msra.mxu1 %v3933_v23  ;;  %v4017_v23 = vld [vmem:[#allocation5 + $0x2b0] ss:$20 sps:$4 sm:$0xff]  }
  0xcf   :  { %2037 = vmatpush1.bf16.msra.mxu0 %v3930_v22  ;;  %2120 = vmatprep.subr.bf16.mxu1 %v3941_v25  ;;  %v4014_v22 = vld [vmem:[#allocation5 + $0x7a8] ss:$20 sps:$4 sm:$0xff]  }
  0xd0   :  { %2038 = vmatprep.subr.bf16.mxu0 %v3938_v24  ;;  %v4022_v24 = vld [vmem:[#allocation5 + $0x7d4] ss:$20 sps:$4 sm:$0xff]   ;;  %v4025_v25 = vld [vmem:[#allocation5 + $0x2dc] ss:$20 sps:$4 sm:$0xff]  }
  0xd2   :  { %2121 = vmatpush1.bf16.msra.mxu1 %v3939_v27  ;;  %v4020_v27 = vld [vmem:[#allocation5 + $0x7d0] ss:$20 sps:$4 sm:$0xff]  }
  0xd3   :  { %2039 = vmatpush1.bf16.msra.mxu0 %v3936_v26  ;;  %2122 = vmatprep.subr.bf16.mxu1 %v3947_v29  ;;  %v4547_v26 = vmov 0   ;;  %v4028_v29 = vld [vmem:[#allocation5 + $0x7fc] ss:$20 sps:$4 sm:$0xff]  }
  0xd4   :  { %2040 = vmatprep.subr.bf16.mxu0 %v3944_v28  ;;  %v4023_v28 = vld [vmem:[#allocation5 + $0x2d8] ss:$20 sps:$4 sm:$0xff]  }
  0xd6   :  { %2123 = vmatpush1.bf16.msra.mxu1 %v3945_v31  ;;  %v4026_v31 = vld [vmem:[#allocation5 + $0x7f8] ss:$20 sps:$4 sm:$0xff]  }
  0xd7   :  { %2041 = vmatpush1.bf16.msra.mxu0 %v3942_v30  ;;  %2124 = vmatprep.subr.bf16.mxu1 %v3953_v33  ;;  %v4031_v30 = vld [vmem:[#allocation5 + $0x304] ss:$20 sps:$4 sm:$0xff]  }
  0xd8   :  { %2042 = vmatprep.subr.bf16.mxu0 %v3950_v32  ;;  %v4029_v32 = vld [vmem:[#allocation5 + $0x300] ss:$20 sps:$4 sm:$0xff]   ;;  %v4034_v33 = vld [vmem:[#allocation5 + $0x824] ss:$20 sps:$4 sm:$0xff]  }
  0xda   :  { %2125 = vmatpush1.bf16.msra.mxu1 %v3951_v37  ;;  %v4035_v37 = vld [vmem:[#allocation5 + $0x328] ss:$20 sps:$4 sm:$0xff]  }
  0xdb   :  { %2043 = vmatpush1.bf16.msra.mxu0 %v3948_v35  ;;  %2126 = vmatprep.subr.bf16.mxu1 %v3959_v39  ;;  %v4032_v35 = vld [vmem:[#allocation5 + $0x820] ss:$20 sps:$4 sm:$0xff]  }
  0xdc   :  { %2044 = vmatprep.subr.bf16.mxu0 %v3956_v38  ;;  %v4040_v38 = vld [vmem:[#allocation5 + $0x84c] ss:$20 sps:$4 sm:$0xff]   ;;  %v4043_v39 = vld [vmem:[#allocation5 + $0x354] ss:$20 sps:$4 sm:$0xff]  }
  0xde   :  { %2127 = vmatpush1.bf16.msra.mxu1 %v3957_v41  ;;  %v4041_v41 = vld [vmem:[#allocation5 + $0x350] ss:$20 sps:$4 sm:$0xff]  }
  0xdf   :  { %2045 = vmatpush1.bf16.msra.mxu0 %v3954_v40  ;;  %2128 = vmatprep.subr.bf16.mxu1 %v3965_v43  ;;  %v4038_v40 = vld [vmem:[#allocation5 + $0x848] ss:$20 sps:$4 sm:$0xff]  }
  0xe0   :  { %2046 = vmatprep.subr.bf16.mxu0 %v3962_v42  ;;  %v4046_v42 = vld [vmem:[#allocation5 + $0x874] ss:$20 sps:$4 sm:$0xff]   ;;  %v4049_v43 = vld [vmem:[#allocation5 + $0x37c] ss:$20 sps:$4 sm:$0xff]  }
  0xe2   :  { %2129 = vmatpush1.bf16.msra.mxu1 %v3963_v45  ;;  %v4047_v45 = vld [vmem:[#allocation5 + $0x378] ss:$20 sps:$4 sm:$0xff]  }
  0xe3   :  { %2047 = vmatpush1.bf16.msra.mxu0 %v3960_v44  ;;  %2130 = vmatprep.subr.bf16.mxu1 %v3971_v47  ;;  %v4044_v44 = vld [vmem:[#allocation5 + $0x870] ss:$20 sps:$4 sm:$0xff]  }
  0xe4   :  { %2048 = vmatprep.subr.bf16.mxu0 %v3968_v46  ;;  %v4052_v46 = vld [vmem:[#allocation5 + $0x89c] ss:$20 sps:$4 sm:$0xff]   ;;  %v4055_v47 = vld [vmem:[#allocation5 + $0x3a4] ss:$20 sps:$4 sm:$0xff]  }
  0xe6   :  { %2131 = vmatpush1.bf16.msra.mxu1 %v3969_v50  ;;  %v4053_v50 = vld [vmem:[#allocation5 + $0x3a0] ss:$20 sps:$4 sm:$0xff]  }
  0xe7   :  { %2049 = vmatpush1.bf16.msra.mxu0 %v3966_v49  ;;  %2132 = vmatprep.subr.bf16.mxu1 %v3977_v53  ;;  %v4050_v49 = vld [vmem:[#allocation5 + $0x898] ss:$20 sps:$4 sm:$0xff]  }
  0xe8   :  { %2050 = vmatprep.subr.bf16.mxu0 %v3974_v51  ;;  %v121_v51 = vld [vmem:[#allocation2 + $0x30] sm:$0xff]  ;;  %v4058_v53 = vld [vmem:[#allocation5 + $0x3cc] ss:$20 sps:$4 sm:$0xff]  }
  0xea   :  { %2133 = vmatpush1.bf16.msra.mxu1 %v3975_v55  ;;  %v4697_v55 = vpack.c.bf16 %v121_v51, %v121_v51  ;;  %v4098_v51 = vld [vmem:[#allocation5 + $0x5f8] ss:$20 sps:$4 sm:$0xff]  }
  0xeb   :  { %2051 = vmatpush1.bf16.msra.mxu0 %v3972_v54  ;;  %2134 = vmatprep.subr.bf16.mxu1 %v3983_v57  ;;  %v4128_v54 = vld [vmem:[#allocation5 + $0x150] ss:$20 sps:$4 sm:$0xff]   ;;  %v4061_v57 = vld [vmem:[#allocation5 + $0x3f4] ss:$20 sps:$4 sm:$0xff]  }
  0xec   :  { %2052 = vmatprep.subr.bf16.mxu0 %v3980_v56  ;;  %v4056_v56 = vld [vmem:[#allocation5 + $0x3c8] ss:$20 sps:$4 sm:$0xff]  }
  0xee   :  { %2135 = vmatpush1.bf16.msra.mxu1 %v3981_v59  ;;  %v4133_v59 = vld [vmem:[#allocation5 + $0x178] ss:$20 sps:$4 sm:$0xff]  }
  0xef   :  { %2053 = vmatpush1.bf16.msra.mxu0 %v3978_v58  ;;  %2136 = vmatprep.subr.bf16.mxu1 %v3989_v61  ;;  %v4129_v58 = vld [vmem:[#allocation5 + $0x10] ss:$20 sps:$4 sm:$0xff]  }
  0xf0   :  { %2054 = vmatprep.subr.bf16.mxu0 %v3986_v60  ;;  %v4059_v60 = vld [vmem:[#allocation5 + $0x3f0] ss:$20 sps:$4 sm:$0xff]  }
  0xf1   :  { %v4064_v61 = vld [vmem:[#allocation5 + $0x41c] ss:$20 sps:$4 sm:$0xff]  }
  0xf2   :  { %2137 = vmatpush1.bf16.msra.mxu1 %v3987_v63  ;;  %v4138_v63 = vld [vmem:[#allocation5 + $0x1a0] ss:$20 sps:$4 sm:$0xff]  }
  0xf3   :  { %2055 = vmatpush1.bf16.msra.mxu0 %v3984_v62  ;;  %2138 = vmatprep.subr.bf16.mxu1 %v3995_v1  ;;  %v4134_v62 = vld [vmem:[#allocation5 + $0x38] ss:$20 sps:$4 sm:$0xff]  }
  0xf4   :  { %2056 = vmatprep.subr.bf16.mxu0 %v3992_v0  ;;  %v4062_v0 = vld [vmem:[#allocation5 + $0x418] ss:$20 sps:$4 sm:$0xff]  }
  0xf5   :  { %v4067_v1 = vld [vmem:[#allocation5 + $0x444] ss:$20 sps:$4 sm:$0xff]  }
  0xf6   :  { %2139 = vmatpush1.bf16.msra.mxu1 %v3993_v3  ;;  %v4143_v3 = vld [vmem:[#allocation5 + $0x1c8] ss:$20 sps:$4 sm:$0xff]  }
  0xf7   :  { %2057 = vmatpush1.bf16.msra.mxu0 %v3990_v2  ;;  %2140 = vmatprep.subr.bf16.mxu1 %v4001_v5  ;;  %v4139_v2 = vld [vmem:[#allocation5 + $0x60] ss:$20 sps:$4 sm:$0xff]  }
  0xf8   :  { %2058 = vmatprep.subr.bf16.mxu0 %v3998_v4  ;;  %v4065_v4 = vld [vmem:[#allocation5 + $0x440] ss:$20 sps:$4 sm:$0xff]  }
  0xf9   :  { %v4070_v5 = vld [vmem:[#allocation5 + $0x46c] ss:$20 sps:$4 sm:$0xff]  }
  0xfa   :  { %2141 = vmatpush1.bf16.msra.mxu1 %v3999_v7  ;;  %v4148_v7 = vld [vmem:[#allocation5 + $0x1f0] ss:$20 sps:$4 sm:$0xff]  }
  0xfb   :  { %2059 = vmatpush1.bf16.msra.mxu0 %v3996_v6  ;;  %2142 = vmatprep.subr.bf16.mxu1 %v4007_v10  ;;  %v4144_v6 = vld [vmem:[#allocation5 + $0x88] ss:$20 sps:$4 sm:$0xff]  }
  0xfc   :  { %2060 = vmatprep.subr.bf16.mxu0 %v4004_v9  ;;  %v4068_v9 = vld [vmem:[#allocation5 + $0x468] ss:$20 sps:$4 sm:$0xff]  }
  0xfd   :  { %v4073_v10 = vld [vmem:[#allocation5 + $0x494] ss:$20 sps:$4 sm:$0xff]  }
  0xfe   :  { %2143 = vmatpush1.bf16.msra.mxu1 %v4005_v13  ;;  %v4071_v13 = vld [vmem:[#allocation5 + $0x490] ss:$20 sps:$4 sm:$0xff]  }
  0xff   :  { %2061 = vmatpush1.bf16.msra.mxu0 %v4002_v12  ;;  %2153 = vmatprep.subr.bf16.mxu1 %v4013_v16  ;;  %v4153_v12 = vld [vmem:[#allocation5 + $0x218] ss:$20 sps:$4 sm:$0xff]   ;;  %v4158_v16 = vld [vmem:[#allocation5 + $0x240] ss:$20 sps:$4 sm:$0xff]  }
 0x100   :  { %2071 = vmatprep.subr.bf16.mxu0 %v4010_v14  ;;  %v4076_v14 = vld [vmem:[#allocation5 + $0x4bc] ss:$20 sps:$4 sm:$0xff]  }
 0x101   :  { %2145 = vmatmul.mubr.bf16.vlgmr.msra.gmra.mrb[4].mxu1 %v4681_v8 }
 0x102   :  { %2063 = vmatmul.mubr.bf16.vlgmr.msra.gmra.mrb[0].mxu0 %v4691_v18  ;;  %2154 = vmatpush1.bf16.msra.mxu1 %v4011_v19  ;;  %v4079_v19 = vld [vmem:[#allocation5 + $0x4e4] ss:$20 sps:$4 sm:$0xff]  }
 0x103   :  { %2072 = vmatpush1.bf16.msra.mxu0 %v4008_v17  ;;  %2155 = vmatprep.subr.bf16.mxu1 %v4019_v21  ;;  %v4074_v17 = vld [vmem:[#allocation5 + $0x4b8] ss:$20 sps:$4 sm:$0xff]   ;;  %v4163_v21 = vld [vmem:[#allocation5 + $0x268] ss:$20 sps:$4 sm:$0xff]  }
 0x104   :  { %2073 = vmatprep.subr.bf16.mxu0 %v4016_v20  ;;  %2103 = vmatprep.mubr.bf16.mxu0 %v4547_v26  ;;  %v4159_v20 = vld [vmem:[#allocation5 + $0x100] ss:$20 sps:$4 sm:$0xff]  }
 0x105   :  { %2185 = vmatprep.mubr.bf16.mxu1 %v4677_v52 }
 0x106   :  { %2156 = vmatpush1.bf16.msra.mxu1 %v4017_v23  ;;  %v4082_v23 = vld [vmem:[#allocation5 + $0x50c] ss:$20 sps:$4 sm:$0xff]  }
 0x107   :  { %2074 = vmatpush1.bf16.msra.mxu0 %v4014_v22  ;;  %2157 = vmatprep.subr.bf16.mxu1 %v4025_v25  ;;  %v4077_v22 = vld [vmem:[#allocation5 + $0x4e0] ss:$20 sps:$4 sm:$0xff]   ;;  %v4168_v25 = vld [vmem:[#allocation5 + $0x650] ss:$20 sps:$4 sm:$0xff]  }
 0x108   :  { %2075 = vmatprep.subr.bf16.mxu0 %v4022_v24  ;;  %v4164_v24 = vld [vmem:[#allocation5 + $0x128] ss:$20 sps:$4 sm:$0xff]  }
 0x10a   :  { %2158 = vmatpush1.bf16.msra.mxu1 %v4023_v28  ;;  %v4085_v28 = vld [vmem:[#allocation5 + $0x534] ss:$20 sps:$4 sm:$0xff]  }
 0x10b   :  { %2076 = vmatpush1.bf16.msra.mxu0 %v4020_v27  ;;  %2159 = vmatprep.subr.bf16.mxu1 %v4031_v30  ;;  %v4080_v27 = vld [vmem:[#allocation5 + $0x508] ss:$20 sps:$4 sm:$0xff]   ;;  %v4171_v30 = vld [vmem:[#allocation5 + $0x678] ss:$20 sps:$4 sm:$0xff]  }
 0x10c   :  { %2077 = vmatprep.subr.bf16.mxu0 %v4028_v29  ;;  %v4169_v29 = vld [vmem:[#allocation5 + $0x510] ss:$20 sps:$4 sm:$0xff]  }
 0x10e   :  { %2160 = vmatpush1.bf16.msra.mxu1 %v4029_v32  ;;  %v4088_v32 = vld [vmem:[#allocation5 + $0x55c] ss:$20 sps:$4 sm:$0xff]  }
 0x10f   :  { %2078 = vmatpush1.bf16.msra.mxu0 %v4026_v31  ;;  %2161 = vmatprep.subr.bf16.mxu1 %v4037_v34  ;;  %v4083_v31 = vld [vmem:[#allocation5 + $0x530] ss:$20 sps:$4 sm:$0xff]   ;;  %v4175_v34 = vld [vmem:[#allocation5 + $0x6a0] ss:$20 sps:$4 sm:$0xff]  }
 0x110   :  { %2079 = vmatprep.subr.bf16.mxu0 %v4034_v33  ;;  %v4173_v33 = vld [vmem:[#allocation5 + $0x538] ss:$20 sps:$4 sm:$0xff]  }
 0x112   :  { %2162 = vmatpush1.bf16.msra.mxu1 %v4035_v37  ;;  %v4091_v37 = vld [vmem:[#allocation5 + $0x584] ss:$20 sps:$4 sm:$0xff]  }
 0x113   :  { %2080 = vmatpush1.bf16.msra.mxu0 %v4032_v35  ;;  %2163 = vmatprep.subr.bf16.mxu1 %v4043_v39  ;;  %v4086_v35 = vld [vmem:[#allocation5 + $0x558] ss:$20 sps:$4 sm:$0xff]   ;;  %v4179_v39 = vld [vmem:[#allocation5 + $0x6c8] ss:$20 sps:$4 sm:$0xff]  }
 0x114   :  { %2081 = vmatprep.subr.bf16.mxu0 %v4040_v38  ;;  %v4177_v38 = vld [vmem:[#allocation5 + $0x560] ss:$20 sps:$4 sm:$0xff]  }
 0x116   :  { %2164 = vmatpush1.bf16.msra.mxu1 %v4041_v41  ;;  %v4181_v41 = vld [vmem:[#allocation5 + $0x588] ss:$20 sps:$4 sm:$0xff]  }
 0x117   :  { %2082 = vmatpush1.bf16.msra.mxu0 %v4038_v40  ;;  %2165 = vmatprep.subr.bf16.mxu1 %v4049_v43  ;;  %v4094_v40 = vld [vmem:[#allocation5 + $0x5ac] ss:$20 sps:$4 sm:$0xff]   ;;  %v4092_v43 = vld [vmem:[#allocation5 + $0x5a8] ss:$20 sps:$4 sm:$0xff]  }
 0x118   :  { %2083 = vmatprep.subr.bf16.mxu0 %v4046_v42  ;;  %v4183_v42 = vld [vmem:[#allocation5 + $0x6f0] ss:$20 sps:$4 sm:$0xff]  }
 0x11a   :  { %2166 = vmatpush1.bf16.msra.mxu1 %v4047_v45  ;;  %v4187_v45 = vld [vmem:[#allocation5 + $0x718] ss:$20 sps:$4 sm:$0xff]  }
 0x11b   :  { %2084 = vmatpush1.bf16.msra.mxu0 %v4044_v44  ;;  %2167 = vmatprep.subr.bf16.mxu1 %v4055_v47  ;;  %v4185_v44 = vld [vmem:[#allocation5 + $0x5b0] ss:$20 sps:$4 sm:$0xff]  }
 0x11c   :  { %2085 = vmatprep.subr.bf16.mxu0 %v4052_v46  ;;  %v4095_v46 = vld [vmem:[#allocation5 + $0x5d0] ss:$20 sps:$4 sm:$0xff]  }
 0x11d   :  { %v4100_v47 = vld [vmem:[#allocation5 + $0x5fc] ss:$20 sps:$4 sm:$0xff]  }
 0x11e   :  { %2168 = vmatpush1.bf16.msra.mxu1 %v4053_v50  ;;  %v4191_v50 = vld [vmem:[#allocation5 + $0x740] ss:$20 sps:$4 sm:$0xff]  }
 0x11f   :  { %2086 = vmatpush1.bf16.msra.mxu0 %v4050_v49  ;;  %2169 = vmatprep.subr.bf16.mxu1 %v4058_v53  ;;  %v4189_v49 = vld [vmem:[#allocation5 + $0x5d8] ss:$20 sps:$4 sm:$0xff]  }
 0x120   :  { %3646 = vmatprep.subr.bf16.mxu0 %v4128_v54  ;;  %v4103_v53 = vld [vmem:[#allocation5 + $0x624] ss:$20 sps:$4 sm:$0xff]   ;;  %v4193_v54 = vld [vmem:[#allocation5 + $0x600] ss:$20 sps:$4 sm:$0xff]  }
 0x122   :  { %2104 = vmatmul.mubr.bf16.vlgmr.msra.gmra.mrb[0].mxu0 %v4697_v55  ;;  %2170 = vmatpush1.bf16.msra.mxu1 %v4056_v56  ;;  %v4195_v56 = vld [vmem:[#allocation5 + $0x768] ss:$20 sps:$4 sm:$0xff]  }
 0x123   :  { %3647 = vmatpush3.bf16.msra.mxu0 %v4129_v58  ;;  %2171 = vmatprep.subr.bf16.mxu1 %v4061_v57  ;;  %v4101_v57 = vld [vmem:[#allocation5 + $0x620] ss:$20 sps:$4 sm:$0xff]  }
 0x124   :  { %3648 = vmatprep.subr.bf16.mxu0 %v4133_v59  ;;  %2308 = vmatprep.mubr.bf16.mxu0 %v4675_v48  ;;  %v4149_v48 = vld [vmem:[#allocation5 + $0xb0] ss:$20 sps:$4 sm:$0xff]   ;;  %v4106_v58 = vld [vmem:[#allocation5 + $0x64c] ss:$20 sps:$4 sm:$0xff]   ;;  %v4197_v59 = vld [vmem:[#allocation5 + $0x628] ss:$20 sps:$4 sm:$0xff]  }
 0x126   :  { %2172 = vmatpush1.bf16.msra.mxu1 %v4059_v60  ;;  %v4201_v60 = vld [vmem:[#allocation8 + $0x4] ss:$8 sps:$4 sm:$0xff]  }
 0x127   :  { %3649 = vmatpush3.bf16.msra.mxu0 %v4134_v62  ;;  %2173 = vmatprep.subr.bf16.mxu1 %v4064_v61  ;;  %v4104_v61 = vld [vmem:[#allocation5 + $0x648] ss:$20 sps:$4 sm:$0xff]  }
 0x128   :  { %3650 = vmatprep.subr.bf16.mxu0 %v4138_v63  ;;  %v4109_v62 = vld [vmem:[#allocation5 + $0x674] ss:$20 sps:$4 sm:$0xff]  }
 0x129   :  { %v4199_v63 = vld [vmem:[#allocation8] ss:$8 sps:$4 sm:$0xff]  }
 0x12a   :  { %2174 = vmatpush1.bf16.msra.mxu1 %v4062_v0  ;;  %v4205_v0 = vld [vmem:[#allocation8 + $0x14] ss:$8 sps:$4 sm:$0xff]  }
 0x12b   :  { %3651 = vmatpush3.bf16.msra.mxu0 %v4139_v2  ;;  %2175 = vmatprep.subr.bf16.mxu1 %v4067_v1  ;;  %v4107_v1 = vld [vmem:[#allocation5 + $0x670] ss:$20 sps:$4 sm:$0xff]  }
 0x12c   :  { %3652 = vmatprep.subr.bf16.mxu0 %v4143_v3  ;;  %v4112_v2 = vld [vmem:[#allocation5 + $0x69c] ss:$20 sps:$4 sm:$0xff]  }
 0x12d   :  { %v4203_v3 = vld [vmem:[#allocation8 + $0x10] ss:$8 sps:$4 sm:$0xff]  }
 0x12e   :  { %2176 = vmatpush1.bf16.msra.mxu1 %v4065_v4  ;;  %v4209_v4 = vld [vmem:[#allocation8 + $0x24] ss:$8 sps:$4 sm:$0xff]  }
 0x12f   :  { %3653 = vmatpush3.bf16.msra.mxu0 %v4144_v6  ;;  %2177 = vmatprep.subr.bf16.mxu1 %v4070_v5  ;;  %v4110_v5 = vld [vmem:[#allocation5 + $0x698] ss:$20 sps:$4 sm:$0xff]  }
 0x130   :  { %3654 = vmatprep.subr.bf16.mxu0 %v4148_v7  ;;  %v4115_v6 = vld [vmem:[#allocation5 + $0x6c4] ss:$20 sps:$4 sm:$0xff]  }
 0x131   :  { %v4207_v7 = vld [vmem:[#allocation8 + $0x20] ss:$8 sps:$4 sm:$0xff]  }
 0x132   :  { %2178 = vmatpush1.bf16.msra.mxu1 %v4068_v9  ;;  %v4213_v9 = vld [vmem:[#allocation8 + $0x34] ss:$8 sps:$4 sm:$0xff]  }
 0x133   :  { %3655 = vmatpush3.bf16.msra.mxu0 %v4149_v48  ;;  %2179 = vmatprep.subr.bf16.mxu1 %v4073_v10  ;;  %v4113_v10 = vld [vmem:[#allocation5 + $0x6c0] ss:$20 sps:$4 sm:$0xff]  }
 0x134   :  { %3656 = vmatprep.subr.bf16.mxu0 %v4153_v12  ;;  %v4118_v48 = vld [vmem:[#allocation5 + $0x6ec] ss:$20 sps:$4 sm:$0xff]  }
 0x135   :  { %v4211_v12 = vld [vmem:[#allocation8 + $0x30] ss:$8 sps:$4 sm:$0xff]  }
 0x136   :  { %2180 = vmatpush1.bf16.msra.mxu1 %v4071_v13  ;;  %v4217_v13 = vld [vmem:[#allocation8 + $0x44] ss:$8 sps:$4 sm:$0xff]  }
 0x137   :  { %3657 = vmatpush3.bf16.msra.mxu0 %v4154_v15  ;;  %2181 = vmatprep.subr.bf16.mxu1 %v4076_v14  ;;  %v4116_v14 = vld [vmem:[#allocation5 + $0x6e8] ss:$20 sps:$4 sm:$0xff]  }
 0x138   :  { %3658 = vmatprep.subr.bf16.mxu0 %v4158_v16  ;;  %v4121_v15 = vld [vmem:[#allocation5 + $0x714] ss:$20 sps:$4 sm:$0xff]  }
 0x139   :  { %v4215_v16 = vld [vmem:[#allocation8 + $0x40] ss:$8 sps:$4 sm:$0xff]  }
 0x13a   :  { %2182 = vmatpush1.bf16.msra.mxu1 %v4074_v17  ;;  %v4221_v17 = vld [vmem:[#allocation8 + $0x54] ss:$8 sps:$4 sm:$0xff]  }
 0x13b   :  { %3659 = vmatpush3.bf16.msra.mxu0 %v4159_v20  ;;  %2183 = vmatprep.subr.bf16.mxu1 %v4079_v19  ;;  %v4119_v19 = vld [vmem:[#allocation5 + $0x710] ss:$20 sps:$4 sm:$0xff]  }
 0x13c   :  { %3660 = vmatprep.subr.bf16.mxu0 %v4163_v21  ;;  %v4124_v20 = vld [vmem:[#allocation5 + $0x73c] ss:$20 sps:$4 sm:$0xff]  }
 0x13d   :  { %v4219_v21 = vld [vmem:[#allocation8 + $0x50] ss:$8 sps:$4 sm:$0xff]  }
 0x13e   :  { %2184 = vmatpush1.bf16.msra.mxu1 %v4077_v22  ;;  %v4122_v22 = vld [vmem:[#allocation5 + $0x738] ss:$20 sps:$4 sm:$0xff]  }
 0x13f   :  { %3661 = vmatpush3.bf16.msra.mxu0 %v4164_v24  ;;  %2194 = vmatprep.subr.bf16.mxu1 %v4082_v23  ;;  %v4225_v23 = vld [vmem:[#allocation8 + $0x64] ss:$8 sps:$4 sm:$0xff]   ;;  %v4127_v24 = vld [vmem:[#allocation5 + $0x764] ss:$20 sps:$4 sm:$0xff]  }
 0x140   :  { %3690 = vmatprep.subr.bf16.mxu0 %v4168_v25  ;;  %v4223_v25 = vld [vmem:[#allocation8 + $0x60] ss:$8 sps:$4 sm:$0xff]  }
 0x141   :  { %2186 = vmatmul.mubr.bf16.vlgmr.msra.gmra.mrb[4].mxu1 %v4683_v11 }
 0x142   :  { %2309 = vmatmul.mubr.bf16.vlgmr.msra.gmra.mrb[4].mxu0 %v4681_v8  ;;  %2195 = vmatpush1.bf16.msra.mxu1 %v4080_v27  ;;  %v4089_v8 = vld [vmem:[#allocation5 + $0x580] ss:$20 sps:$4 sm:$0xff]  }
 0x143   :  { %2226 = vmatprep.mubr.bf16.mxu1 %v4688_v36  ;;  %2196 = vmatprep.subr.bf16.mxu1 %v4085_v28  ;;  %v4125_v27 = vld [vmem:[#allocation5 + $0x760] ss:$20 sps:$4 sm:$0xff]  }
 0x144   :  { %3691 = vmatpush3.bf16.msra.mxu0 %v4169_v29  ;;  %2388 = vmatprep.mubr.bf16.mxu0 %v4688_v36  ;;  %v4097_v36 = vld [vmem:[#allocation5 + $0x5d4] ss:$20 sps:$4 sm:$0xff]   ;;  %v4229_v28 = vld [vmem:[#allocation8 + $0x74] ss:$8 sps:$4 sm:$0xff]  }
 0x145   :  { %3692 = vmatprep.subr.bf16.mxu0 %v4171_v30  ;;  %v4132_v29 = vld [vmem:[#allocation5 + $0x78c] ss:$20 sps:$4 sm:$0xff]  }
 0x146   :  { %2197 = vmatpush1.bf16.msra.mxu1 %v4083_v31  ;;  %v4227_v30 = vld [vmem:[#allocation8 + $0x70] ss:$8 sps:$4 sm:$0xff]   ;;  %v4233_v31 = vld [vmem:[#allocation8 + $0x84] ss:$8 sps:$4 sm:$0xff]  }
 0x147   :  { %2198 = vmatprep.subr.bf16.mxu1 %v4088_v32  ;;  %v4130_v32 = vld [vmem:[#allocation5 + $0x788] ss:$20 sps:$4 sm:$0xff]  }
 0x148   :  { %3693 = vmatpush3.bf16.msra.mxu0 %v4173_v33  ;;  %v4137_v33 = vld [vmem:[#allocation5 + $0x7b4] ss:$20 sps:$4 sm:$0xff]  }
 0x149   :  { %3694 = vmatprep.subr.bf16.mxu0 %v4175_v34  ;;  %v4231_v34 = vld [vmem:[#allocation8 + $0x80] ss:$8 sps:$4 sm:$0xff]  }
 0x14a   :  { %2199 = vmatpush1.bf16.msra.mxu1 %v4086_v35  ;;  %v4237_v35 = vld [vmem:[#allocation8 + $0x94] ss:$8 sps:$4 sm:$0xff]  }
 0x14b   :  { %2200 = vmatprep.subr.bf16.mxu1 %v4091_v37  ;;  %v4135_v37 = vld [vmem:[#allocation5 + $0x7b0] ss:$20 sps:$4 sm:$0xff]  }
 0x14c   :  { %3695 = vmatpush3.bf16.msra.mxu0 %v4177_v38  ;;  %v4142_v38 = vld [vmem:[#allocation5 + $0x7dc] ss:$20 sps:$4 sm:$0xff]  }
 0x14d   :  { %3696 = vmatprep.subr.bf16.mxu0 %v4179_v39  ;;  %v4235_v39 = vld [vmem:[#allocation8 + $0x90] ss:$8 sps:$4 sm:$0xff]  }
 0x14e   :  { %2201 = vmatpush1.bf16.msra.mxu1 %v4089_v8  ;;  %v4240_v8 = vld [vmem:[#allocation8 + $0xa4] ss:$8 sps:$4 sm:$0xff]  }
 0x14f   :  { %2202 = vmatprep.subr.bf16.mxu1 %v4094_v40  ;;  %v4140_v40 = vld [vmem:[#allocation5 + $0x7d8] ss:$20 sps:$4 sm:$0xff]  }
 0x150   :  { %3697 = vmatpush3.bf16.msra.mxu0 %v4181_v41  ;;  %v4147_v41 = vld [vmem:[#allocation5 + $0x804] ss:$20 sps:$4 sm:$0xff]  }
 0x151   :  { %3698 = vmatprep.subr.bf16.mxu0 %v4183_v42  ;;  %v4238_v42 = vld [vmem:[#allocation8 + $0xa0] ss:$8 sps:$4 sm:$0xff]  }
 0x152   :  { %2203 = vmatpush1.bf16.msra.mxu1 %v4092_v43  ;;  %v4243_v43 = vld [vmem:[#allocation8 + $0xb4] ss:$8 sps:$4 sm:$0xff]  }
 0x153   :  { %2204 = vmatprep.subr.bf16.mxu1 %v4097_v36  ;;  %v4152_v36 = vld [vmem:[#allocation5 + $0x82c] ss:$20 sps:$4 sm:$0xff]  }
 0x154   :  { %3699 = vmatpush3.bf16.msra.mxu0 %v4185_v44  ;;  %v4241_v44 = vld [vmem:[#allocation8 + $0xb0] ss:$8 sps:$4 sm:$0xff]  }
 0x155   :  { %3700 = vmatprep.subr.bf16.mxu0 %v4187_v45  ;;  %v4246_v45 = vld [vmem:[#allocation8 + $0xc4] ss:$8 sps:$4 sm:$0xff]  }
 0x156   :  { %2205 = vmatpush1.bf16.msra.mxu1 %v4095_v46  ;;  %v4150_v46 = vld [vmem:[#allocation5 + $0x828] ss:$20 sps:$4 sm:$0xff]  }
 0x157   :  { %2206 = vmatprep.subr.bf16.mxu1 %v4100_v47  ;;  %v4157_v47 = vld [vmem:[#allocation5 + $0x854] ss:$20 sps:$4 sm:$0xff]  }
 0x158   :  { %3701 = vmatpush3.bf16.msra.mxu0 %v4189_v49  ;;  %v4244_v49 = vld [vmem:[#allocation8 + $0xc0] ss:$8 sps:$4 sm:$0xff]  }
 0x159   :  { %3702 = vmatprep.subr.bf16.mxu0 %v4191_v50  ;;  %v4249_v50 = vld [vmem:[#allocation8 + $0xd4] ss:$8 sps:$4 sm:$0xff]  }
 0x15a   :  { %2207 = vmatpush1.bf16.msra.mxu1 %v4098_v51  ;;  %v4155_v51 = vld [vmem:[#allocation5 + $0x850] ss:$20 sps:$4 sm:$0xff]  }
 0x15b   :  { %2208 = vmatprep.subr.bf16.mxu1 %v4103_v53  ;;  %v4162_v53 = vld [vmem:[#allocation5 + $0x87c] ss:$20 sps:$4 sm:$0xff]  }
 0x15c   :  { %3703 = vmatpush3.bf16.msra.mxu0 %v4193_v54  ;;  %v4247_v54 = vld [vmem:[#allocation8 + $0xd0] ss:$8 sps:$4 sm:$0xff]  }
 0x15d   :  { %3704 = vmatprep.subr.bf16.mxu0 %v4195_v56 }
 0x15e   :  { %2209 = vmatpush1.bf16.msra.mxu1 %v4101_v57  ;;  %v4252_v57 = vld [vmem:[#allocation8 + $0xe4] ss:$8 sps:$4 sm:$0xff]  }
 0x15f   :  { %2210 = vmatprep.subr.bf16.mxu1 %v4106_v58 }
 0x160   :  { %3705 = vmatpush3.bf16.msra.mxu0 %v4197_v59 }
 0x161   :  { %2938 = vmatprep.subr.bf16.mxu0 %v4201_v60  ;;  %v4160_v60 = vld [vmem:[#allocation5 + $0x878] ss:$20 sps:$4 sm:$0xff]  }
 0x162   :  { %2211 = vmatpush1.bf16.msra.mxu1 %v4104_v61 }
 0x163   :  { %2389 = vmatmul.mubr.bf16.vlgmr.msra.gmra.mrb[8].mxu0 %v4691_v18  ;;  %2212 = vmatprep.subr.bf16.mxu1 %v4109_v62  ;;  %v4167_v62 = vld [vmem:[#allocation5 + $0x8a4] ss:$20 sps:$4 sm:$0xff]  }
 0x164   :  { %2939 = vmatpush1.bf16.msra.mxu0 %v4199_v63  ;;  %v4250_v63 = vld [vmem:[#allocation8 + $0xe0] ss:$8 sps:$4 sm:$0xff]  }
 0x165   :  { %2940 = vmatprep.subr.bf16.mxu0 %v4205_v0  ;;  %v4255_v0 = vld [vmem:[#allocation8 + $0xf4] ss:$8 sps:$4 sm:$0xff]  }
 0x166   :  { %2213 = vmatpush1.bf16.msra.mxu1 %v4107_v1  ;;  %v4165_v1 = vld [vmem:[#allocation5 + $0x8a0] ss:$20 sps:$4 sm:$0xff]  }
 0x167   :  { %2214 = vmatprep.subr.bf16.mxu1 %v4112_v2  ;;  %v4170_v2 = vld [vmem:[#allocation5 + $0x3d0] ss:$20 sps:$4 sm:$0xff]  }
 0x168   :  { %2941 = vmatpush1.bf16.msra.mxu0 %v4203_v3  ;;  %v4253_v3 = vld [vmem:[#allocation8 + $0xf0] ss:$8 sps:$4 sm:$0xff]  }
 0x169   :  { %2942 = vmatprep.subr.bf16.mxu0 %v4209_v4  ;;  %v4258_v4 = vld [vmem:[#allocation8 + $0x104] ss:$8 sps:$4 sm:$0xff]  }
 0x16a   :  { %2215 = vmatpush1.bf16.msra.mxu1 %v4110_v5  ;;  %v4172_v5 = vld [vmem:[#allocation5 + $0x290] ss:$20 sps:$4 sm:$0xff]  }
 0x16b   :  { %2216 = vmatprep.subr.bf16.mxu1 %v4115_v6  ;;  %v4174_v6 = vld [vmem:[#allocation5 + $0x3f8] ss:$20 sps:$4 sm:$0xff]  }
 0x16c   :  { %2943 = vmatpush1.bf16.msra.mxu0 %v4207_v7  ;;  %v4176_v7 = vld [vmem:[#allocation5 + $0x2b8] ss:$20 sps:$4 sm:$0xff]  }
 0x16d   :  { %2944 = vmatprep.subr.bf16.mxu0 %v4213_v9  ;;  %v4178_v9 = vld [vmem:[#allocation5 + $0x420] ss:$20 sps:$4 sm:$0xff]  }
 0x16e   :  { %2217 = vmatpush1.bf16.msra.mxu1 %v4113_v10  ;;  %v4180_v10 = vld [vmem:[#allocation5 + $0x2e0] ss:$20 sps:$4 sm:$0xff]  }
 0x16f   :  { %2218 = vmatprep.subr.bf16.mxu1 %v4118_v48  ;;  %v4182_v48 = vld [vmem:[#allocation5 + $0x448] ss:$20 sps:$4 sm:$0xff]  }
 0x170   :  { %2945 = vmatpush1.bf16.msra.mxu0 %v4211_v12  ;;  %v4184_v12 = vld [vmem:[#allocation5 + $0x308] ss:$20 sps:$4 sm:$0xff]  }
 0x171   :  { %2946 = vmatprep.subr.bf16.mxu0 %v4217_v13  ;;  %v4186_v13 = vld [vmem:[#allocation5 + $0x470] ss:$20 sps:$4 sm:$0xff]  }
 0x172   :  { %2219 = vmatpush1.bf16.msra.mxu1 %v4116_v14  ;;  %v4188_v14 = vld [vmem:[#allocation5 + $0x330] ss:$20 sps:$4 sm:$0xff]  }
 0x173   :  { %2220 = vmatprep.subr.bf16.mxu1 %v4121_v15  ;;  %v4190_v15 = vld [vmem:[#allocation5 + $0x498] ss:$20 sps:$4 sm:$0xff]  }
 0x174   :  { %2947 = vmatpush1.bf16.msra.mxu0 %v4215_v16  ;;  %v4192_v16 = vld [vmem:[#allocation5 + $0x358] ss:$20 sps:$4 sm:$0xff]  }
 0x175   :  { %2948 = vmatprep.subr.bf16.mxu0 %v4221_v17  ;;  %v4194_v17 = vld [vmem:[#allocation5 + $0x4c0] ss:$20 sps:$4 sm:$0xff]  }
 0x176   :  { %2221 = vmatpush1.bf16.msra.mxu1 %v4119_v19  ;;  %v4198_v19 = vld [vmem:[#allocation5 + $0x4e8] ss:$20 sps:$4 sm:$0xff]  }
 0x177   :  { %2222 = vmatprep.subr.bf16.mxu1 %v4124_v20  ;;  %v4202_v20 = vld [vmem:[#allocation5 + $0x3a8] ss:$20 sps:$4 sm:$0xff]  }
 0x178   :  { %2949 = vmatpush1.bf16.msra.mxu0 %v4219_v21  ;;  %v4206_v21 = vld [vmem:[#allocation5 + $0x790] ss:$20 sps:$4 sm:$0xff]  }
 0x179   :  { %2950 = vmatprep.subr.bf16.mxu0 %v4225_v23  ;;  %v4210_v23 = vld [vmem:[#allocation5 + $0x7b8] ss:$20 sps:$4 sm:$0xff]  }
 0x17a   :  { %2223 = vmatpush1.bf16.msra.mxu1 %v4122_v22  ;;  %v4548_v22 = vmov 0.0  }
 0x17b   :  { %2224 = vmatprep.subr.bf16.mxu1 %v4127_v24  ;;  %v4214_v24 = vld [vmem:[#allocation5 + $0x7e0] ss:$20 sps:$4 sm:$0xff]  }
 0x17c   :  { %2951 = vmatpush1.bf16.msra.mxu0 %v4223_v25  ;;  %v4218_v25 = vld [vmem:[#allocation5 + $0x808] ss:$20 sps:$4 sm:$0xff]  }
 0x17d   :  { %2952 = vmatprep.subr.bf16.mxu0 %v4229_v28  ;;  %v4226_v28 = vld [vmem:[#allocation5 + $0x858] ss:$20 sps:$4 sm:$0xff]  }
 0x17e   :  { %2225 = vmatpush1.bf16.msra.mxu1 %v4125_v27  ;;  %v4222_v27 = vld [vmem:[#allocation5 + $0x830] ss:$20 sps:$4 sm:$0xff]  }
 0x17f   :  { %2235 = vmatprep.subr.bf16.mxu1 %v4132_v29  ;;  %v4230_v29 = vld [vmem:[#allocation5 + $0x880] ss:$20 sps:$4 sm:$0xff]  }
 0x180   :  { %2953 = vmatpush1.bf16.msra.mxu0 %v4227_v30  ;;  %v467_v30 = vlaneseq }
 0x181   :  { %2954 = vmatprep.subr.bf16.mxu0 %v4233_v31  ;;  %2227 = vmatmul.mubr.bf16.vlgmr.msra.gmra.mrb[4].mxu1 %v4691_v18  ;;  %v4145_v18 = vld [vmem:[#allocation5 + $0x800] ss:$20 sps:$4 sm:$0xff]  }
 0x182   :  { %2236 = vmatpush1.bf16.msra.mxu1 %v4130_v32  ;;  %2267 = vmatprep.mubr.bf16.mxu1 %v4547_v26  ;;  %v4716_v31 = vshrl.u32 %v467_v30, 7  ;;  %v4330_v30 = vld [vmem:[#allocation11 + $0x48] sm:$0xff]  }
 0x183   :  { %2237 = vmatprep.subr.bf16.mxu1 %v4137_v33  ;;  %v4719_v33 = vld [vmem:[#allocation7] sm:$0x1f] }
 0x184   :  { %2955 = vmatpush1.bf16.msra.mxu0 %v4231_v34  ;;  %v469_v32 = vsub.s32 0, %v4716_v31  ;;  %v473_v34 = vsub.s32 1, %v4716_v31 }
 0x185   :  { %2956 = vmatprep.subr.bf16.mxu0 %v4237_v35 }
 0x186   :  { %2238 = vmatpush1.bf16.msra.mxu1 %v4135_v37  ;;  %v470_v35 = vrot.slane %v4719_v33, %v469_v32  ;;  %v474_v37 = vrot.slane %v4719_v33, %v473_v34 }
 0x187   :  { %2239 = vmatprep.subr.bf16.mxu1 %v4142_v38 }
 0x188   :  { %2957 = vmatpush1.bf16.msra.mxu0 %v4235_v39 }
 0x189   :  { %2958 = vmatprep.subr.bf16.mxu0 %v4240_v8 }
 0x18a   :  { %2240 = vmatpush1.bf16.msra.mxu1 %v4140_v40 }
 0x18b   :  { %2241 = vmatprep.subr.bf16.mxu1 %v4147_v41 }
 0x18c   :  { %2959 = vmatpush1.bf16.msra.mxu0 %v4238_v42 }
 0x18d   :  { %2960 = vmatprep.subr.bf16.mxu0 %v4243_v43 }
 0x18e   :  { %2242 = vmatpush1.bf16.msra.mxu1 %v4145_v18 }
 0x18f   :  { %2243 = vmatprep.subr.bf16.mxu1 %v4152_v36 }
 0x190   :  { %2961 = vmatpush1.bf16.msra.mxu0 %v4241_v44 }
 0x191   :  { %2962 = vmatprep.subr.bf16.mxu0 %v4246_v45  ;;  %v4256_v45 = vld [vmem:[#allocation8 + $0x100] ss:$8 sps:$4 sm:$0xff]  }
 0x192   :  { %2244 = vmatpush1.bf16.msra.mxu1 %v4150_v46 }
 0x193   :  { %2245 = vmatprep.subr.bf16.mxu1 %v4157_v47  ;;  %v4261_v47 = vld [vmem:[#allocation8 + $0x114] ss:$8 sps:$4 sm:$0xff]  }
 0x194   :  { %2963 = vmatpush1.bf16.msra.mxu0 %v4244_v49  ;;  %v4708_v56 = vpop.f32.mrb[0].mxu1  ;;  %v4259_v49 = vld [vmem:[#allocation8 + $0x110] ss:$8 sps:$4 sm:$0xff]  }
 0x195   :  { %2964 = vmatprep.subr.bf16.mxu0 %v4249_v50  ;;  %v4710_v58 = vpop.f32.mrb[1].mxu1  ;;  %v1983_v38 = vadd.f32 %v4708_v56, %v470_v35  ;;  %v4264_v50 = vld [vmem:[#allocation8 + $0x124] ss:$8 sps:$4 sm:$0xff]  }
 0x196   :  { %v1986_v59 = vpop.f32.mrb[2].mxu1  ;;  %2246 = vmatpush1.bf16.msra.mxu1 %v4155_v51  ;;  %v4262_v51 = vld [vmem:[#allocation8 + $0x120] ss:$8 sps:$4 sm:$0xff]   ;;  %v4270_v56 = vld [vmem:[#allocation8 + $0x144] ss:$8 sps:$4 sm:$0xff]  }
 0x197   :  { %v1987_v61 = vpop.f32.mrb[3].mxu1  ;;  %2247 = vmatprep.subr.bf16.mxu1 %v4162_v53  ;;  %v4267_v53 = vld [vmem:[#allocation8 + $0x134] ss:$8 sps:$4 sm:$0xff]   ;;  %v4271_v59 = vld [vmem:[#allocation8 + $0x150] ss:$8 sps:$4 sm:$0xff]  }
 0x198   :  { %2965 = vmatpush1.bf16.msra.mxu0 %v4247_v54  ;;  %v4265_v54 = vld [vmem:[#allocation8 + $0x130] ss:$8 sps:$4 sm:$0xff]   ;;  %v4274_v61 = vld [vmem:[#allocation8 + $0x160] ss:$8 sps:$4 sm:$0xff]  }
 0x199   :  { %2966 = vmatprep.subr.bf16.mxu0 %v4252_v57  ;;  %v4268_v57 = vld [vmem:[#allocation8 + $0x140] ss:$8 sps:$4 sm:$0xff]  }
 0x19a   :  { %2248 = vmatpush1.bf16.msra.mxu1 %v4160_v60  ;;  %v4276_v60 = vld [vmem:[#allocation8 + $0x164] ss:$8 sps:$4 sm:$0xff]  }
 0x19b   :  { %2249 = vmatprep.subr.bf16.mxu1 %v4167_v62  ;;  %v4279_v62 = vld [vmem:[#allocation8 + $0x174] ss:$8 sps:$4 sm:$0xff]   ;;  %v4331_v35 = vld [vmem:[#allocation11 + $0x8] sm:$0xff]  }
 0x19c   :  { %2967 = vmatpush1.bf16.msra.mxu0 %v4250_v63 }
 0x19d   :  { %2968 = vmatprep.subr.bf16.mxu0 %v4255_v0 }
 0x19e   :  { %2250 = vmatpush1.bf16.msra.mxu1 %v4165_v1  ;;  %v4277_v1 = vld [vmem:[#allocation8 + $0x170] ss:$8 sps:$4 sm:$0xff]  }
 0x19f   :  { %3668 = vmatprep.subr.bf16.mxu1 %v4170_v2 }
 0x1a0   :  { %2969 = vmatpush1.bf16.msra.mxu0 %v4253_v3 }
 0x1a1   :  { %2979 = vmatprep.subr.bf16.mxu0 %v4258_v4  ;;  %2268 = vmatmul.mubr.bf16.vlgmr.msra.gmra.mrb[4].mxu1 %v4697_v55  ;;  %v4282_v4 = vld [vmem:[#allocation8 + $0x184] ss:$8 sps:$4 sm:$0xff]  }
 0x1a2   :  { %3669 = vmatpush3.bf16.msra.mxu1 %v4172_v5  ;;  %2348 = vmatprep.mubr.bf16.mxu1 %v4677_v52  ;;  %v4196_v52 = vld [vmem:[#allocation5 + $0x380] ss:$20 sps:$4 sm:$0xff]  }
 0x1a3   :  { %3670 = vmatprep.subr.bf16.mxu1 %v4174_v6  ;;  %v4280_v6 = vld [vmem:[#allocation8 + $0x180] ss:$8 sps:$4 sm:$0xff]  }
 0x1a6   :  { %3671 = vmatpush3.bf16.msra.mxu1 %v4176_v7  ;;  %v4285_v7 = vld [vmem:[#allocation8 + $0x194] ss:$8 sps:$4 sm:$0xff]  }
 0x1a7   :  { %3672 = vmatprep.subr.bf16.mxu1 %v4178_v9  ;;  %v4283_v9 = vld [vmem:[#allocation8 + $0x190] ss:$8 sps:$4 sm:$0xff]  }
 0x1aa   :  { %3673 = vmatpush3.bf16.msra.mxu1 %v4180_v10  ;;  %v4288_v10 = vld [vmem:[#allocation8 + $0x1a4] ss:$8 sps:$4 sm:$0xff]  }
 0x1ab   :  { %3674 = vmatprep.subr.bf16.mxu1 %v4182_v48  ;;  %v4286_v48 = vld [vmem:[#allocation8 + $0x1a0] ss:$8 sps:$4 sm:$0xff]  }
 0x1ae   :  { %3675 = vmatpush3.bf16.msra.mxu1 %v4184_v12  ;;  %v4291_v12 = vld [vmem:[#allocation8 + $0x1b4] ss:$8 sps:$4 sm:$0xff]  }
 0x1af   :  { %3676 = vmatprep.subr.bf16.mxu1 %v4186_v13  ;;  %v4289_v13 = vld [vmem:[#allocation8 + $0x1b0] ss:$8 sps:$4 sm:$0xff]  }
 0x1b2   :  { %3677 = vmatpush3.bf16.msra.mxu1 %v4188_v14  ;;  %v4294_v14 = vld [vmem:[#allocation8 + $0x1c4] ss:$8 sps:$4 sm:$0xff]  }
 0x1b3   :  { %3678 = vmatprep.subr.bf16.mxu1 %v4190_v15  ;;  %v4292_v15 = vld [vmem:[#allocation8 + $0x1c0] ss:$8 sps:$4 sm:$0xff]  }
 0x1b6   :  { %3679 = vmatpush3.bf16.msra.mxu1 %v4192_v16  ;;  %v4297_v16 = vld [vmem:[#allocation8 + $0x1d4] ss:$8 sps:$4 sm:$0xff]  }
 0x1b7   :  { %3680 = vmatprep.subr.bf16.mxu1 %v4194_v17  ;;  %v4295_v17 = vld [vmem:[#allocation8 + $0x1d0] ss:$8 sps:$4 sm:$0xff]  }
 0x1ba   :  { %3681 = vmatpush3.bf16.msra.mxu1 %v4196_v52  ;;  %v4300_v52 = vld [vmem:[#allocation8 + $0x1e4] ss:$8 sps:$4 sm:$0xff]  }
 0x1bb   :  { %3682 = vmatprep.subr.bf16.mxu1 %v4198_v19  ;;  %v4298_v19 = vld [vmem:[#allocation8 + $0x1e0] ss:$8 sps:$4 sm:$0xff]  }
 0x1be   :  { %3683 = vmatpush3.bf16.msra.mxu1 %v4202_v20  ;;  %v4303_v20 = vld [vmem:[#allocation8 + $0x1f4] ss:$8 sps:$4 sm:$0xff]  }
 0x1bf   :  { %3743 = vmatprep.subr.bf16.mxu1 %v4548_v22 }
 0x1c1   :  { %2349 = vmatmul.mubr.bf16.vlgmr.msra.gmra.mrb[8].mxu1 %v4683_v11  ;;  %v4234_v11 = vld [vmem:[#allocation5 + $0x8a8] ss:$20 sps:$4 sm:$0xff]  }
 0x1c2   :  { %3744 = vmatpush3.bf16.msra.mxu1 %v4206_v21  ;;  %3759 = vmatprep.mubr.msk.bf16.mxu1 %vm4549_vm0, %v4548_v22 }
 0x1c3   :  { %3745 = vmatprep.subr.bf16.mxu1 %v4548_v22 }
 0x1c6   :  { %3746 = vmatpush3.bf16.msra.mxu1 %v4210_v23 }
 0x1c7   :  { %3747 = vmatprep.subr.bf16.mxu1 %v4548_v22 }
 0x1ca   :  { %3748 = vmatpush3.bf16.msra.mxu1 %v4214_v24 }
 0x1cb   :  { %3749 = vmatprep.subr.bf16.mxu1 %v4548_v22 }
 0x1ce   :  { %3750 = vmatpush3.bf16.msra.mxu1 %v4218_v25  ;;  %v4306_v25 = vld [vmem:[#allocation8 + $0x204] ss:$8 sps:$4 sm:$0xff]  }
 0x1cf   :  { %3751 = vmatprep.subr.bf16.mxu1 %v4548_v22 }
 0x1d2   :  { %3752 = vmatpush3.bf16.msra.mxu1 %v4222_v27 }
 0x1d3   :  { %3753 = vmatprep.subr.bf16.mxu1 %v4548_v22 }
 0x1d6   :  { %3754 = vmatpush3.bf16.msra.mxu1 %v4226_v28 }
 0x1d7   :  { %3755 = vmatprep.subr.bf16.mxu1 %v4548_v22 }
 0x1da   :  { %3756 = vmatpush3.bf16.msra.mxu1 %v4230_v29  ;;  %v4328_v29 = vld [vmem:[#allocation11 + $0x40] sm:$0xff]  }
 0x1db   :  { %3757 = vmatprep.subr.bf16.mxu1 %v4548_v22  ;;  %v4301_v22 = vld [vmem:[#allocation8 + $0x1f0] ss:$8 sps:$4 sm:$0xff]  }
 0x1de   :  { %3758 = vmatpush3.bf16.msra.mxu1 %v4234_v11  ;;  %v4329_v11 = vld [vmem:[#allocation11] sm:$0xff]  }
 0x1df   :  { %3721 = vmatprep.subr.bf16.mxu1 %v4328_v29  ;;  %v4342_v29 = vld [vmem:[#allocation11 + $0x78] sm:$0xff]  }
 0x1e1   :  { %3760 = vmatmul.mubr.bf16.vlgmr.msra.gmra.mrb[12].mxu1 %v4697_v55  ;;  %v1985_v55 = vadd.f32 %v4710_v58, %v474_v37  ;;  %v4273_v58 = vld [vmem:[#allocation8 + $0x154] ss:$8 sps:$4 sm:$0xff]  }
 0x1e2   :  { %3722 = vmatpush3.bf16.msra.mxu1 %v4329_v11  ;;  %v4332_v37 = vld [vmem:[#allocation11 + $0x50] sm:$0xff]   ;;  %v4343_v11 = vld [vmem:[#allocation11 + $0x38] sm:$0xff]  }
 0x1e3   :  { %3723 = vmatprep.subr.bf16.mxu1 %v4330_v30  ;;  %v2526_v30 = vld [vmem:[#allocation10] sm:$0x3] }
 0x1e6   :  { %3724 = vmatpush3.bf16.msra.mxu1 %v4331_v35  ;;  %v2535_v35 = vrot.slane %v2526_v30, %v473_v34 }
 0x1e7   :  { %3725 = vmatprep.subr.bf16.mxu1 %v4332_v37 }
 0x1f5   :  { %v2105_v39 = vpop.f32.mrb[0].mxu0 }
 0x1f6   :  { %v3764_v8 = vadd.f32 %v2105_v39, %v1983_v38  ;;  %v2107_v40 = vpop.f32.mrb[1].mxu0  ;;  %v4333_v38 = vld [vmem:[#allocation11 + $0x10] sm:$0xff]   ;;  %v4335_v39 = vld [vmem:[#allocation11 + $0x18] sm:$0xff]  }
 0x1f7   :  { %v3766_v41 = vadd.f32 %v2107_v40, %v1985_v55  ;;  %v2109_v42 = vpop.f32.mrb[2].mxu0  ;;  %v4334_v55 = vld [vmem:[#allocation11 + $0x58] sm:$0xff]   ;;  %3726 = vmatpush3.bf16.msra.mxu1 %v4333_v38  ;;  %v4337_v40 = vld [vmem:[#allocation11 + $0x20] sm:$0xff]  }
 0x1f8   :  { %v2436_v43 = vmax.f32 %v3764_v8, 0.0  ;;  %v2110_v18 = vpop.f32.mrb[3].mxu0  ;;  %3727 = vmatprep.subr.bf16.mxu1 %v4334_v55  ;;  %v4336_v8 = vld [vmem:[#allocation11 + $0x60] sm:$0xff]   ;;  %v4339_v42 = vld [vmem:[#allocation11 + $0x28] sm:$0xff]  }
 0x1f9   :  { %v2437_v36 = vmax.f32 %v3766_v41, 0.0  ;;  %v4338_v41 = vld [vmem:[#allocation11 + $0x68] sm:$0xff]   ;;  %v481_v18 = vsub.s32 3, %v4716_v31 }
 0x1fa   :  { %v2441_v46 = vpack.c.bf16 %v2436_v43, %v2436_v43  ;;  %v477_v43 = vsub.s32 2, %v4716_v31 }
 0x1fb   :  { %v2442_v44 = vpack.c.bf16 %v2437_v36, %v2437_v36  ;;  %3728 = vmatpush3.bf16.msra.mxu1 %v4335_v39 }
 0x1fc   :  { %3729 = vmatprep.subr.bf16.mxu1 %v4336_v8  ;;  %v478_v36 = vrot.slane %v4719_v33, %v477_v43 }
 0x1fd   :  { %2970 = vmatprep.mubr.bf16.mxu0 %v2442_v44  ;;  %v482_v44 = vrot.slane %v4719_v33, %v481_v18 }
 0x1fe   :  { %2971 = vmatmul.mubr.bf16.vlgmr.msra.gmra.mrb[12].mxu0 %v2441_v46 }
 0x1ff   :  { %2980 = vmatpush1.bf16.msra.mxu0 %v4256_v45  ;;  %3730 = vmatpush3.bf16.msra.mxu1 %v4337_v40 }
 0x200   :  { %2981 = vmatprep.subr.bf16.mxu0 %v4261_v47  ;;  %3731 = vmatprep.subr.bf16.mxu1 %v4338_v41 }
 0x203   :  { %2982 = vmatpush1.bf16.msra.mxu0 %v4259_v49  ;;  %3732 = vmatpush3.bf16.msra.mxu1 %v4339_v42 }
 0x204   :  { %2983 = vmatprep.subr.bf16.mxu0 %v4264_v50 }
 0x207   :  { %2984 = vmatpush1.bf16.msra.mxu0 %v4262_v51 }
 0x208   :  { %2985 = vmatprep.subr.bf16.mxu0 %v4267_v53 }
 0x20b   :  { %2986 = vmatpush1.bf16.msra.mxu0 %v4265_v54 }
 0x20c   :  { %2987 = vmatprep.subr.bf16.mxu0 %v4270_v56 }
 0x20f   :  { %2988 = vmatpush1.bf16.msra.mxu0 %v4268_v57  ;;  %v4304_v57 = vld [vmem:[#allocation8 + $0x200] ss:$8 sps:$4 sm:$0xff]  }
 0x210   :  { %2989 = vmatprep.subr.bf16.mxu0 %v4273_v58 }
 0x213   :  { %2990 = vmatpush1.bf16.msra.mxu0 %v4271_v59  ;;  %v4309_v59 = vld [vmem:[#allocation8 + $0x214] ss:$8 sps:$4 sm:$0xff]  }
 0x214   :  { %2991 = vmatprep.subr.bf16.mxu0 %v4276_v60  ;;  %v4307_v60 = vld [vmem:[#allocation8 + $0x210] ss:$8 sps:$4 sm:$0xff]  }
 0x215   :  { %v3662_v63 = vpop.f32.mrb[4].mxu0 }
 0x216   :  { %v3663_v0 = vpop.f32.mrb[5].mxu0 }
 0x217   :  { %2992 = vmatpush1.bf16.msra.mxu0 %v4274_v61  ;;  %v4730_v2 = vadd.f32 %v3663_v0, %v3662_v63  ;;  %v3665_v3 = vpop.f32.mrb[6].mxu0  ;;  %v4312_v61 = vld [vmem:[#allocation8 + $0x224] ss:$8 sps:$4 sm:$0xff]   ;;  %v4315_v63 = vld [vmem:[#allocation8 + $0x234] ss:$8 sps:$4 sm:$0xff]  }
 0x218   :  { %2993 = vmatprep.subr.bf16.mxu0 %v4279_v62  ;;  %v3666_v5 = vpop.f32.mrb[7].mxu0  ;;  %v4310_v62 = vld [vmem:[#allocation8 + $0x220] ss:$8 sps:$4 sm:$0xff]   ;;  %v4313_v0 = vld [vmem:[#allocation8 + $0x230] ss:$8 sps:$4 sm:$0xff]  }
 0x219   :  { %v4316_v3 = vld [vmem:[#allocation8 + $0x240] ss:$8 sps:$4 sm:$0xff]   ;;  %v485_v5 = vsub.s32 4, %v4716_v31 }
 0x21b   :  { %2994 = vmatpush1.bf16.msra.mxu0 %v4277_v1  ;;  %v4318_v1 = vld [vmem:[#allocation8 + $0x244] ss:$8 sps:$4 sm:$0xff]  }
 0x21c   :  { %2995 = vmatprep.subr.bf16.mxu0 %v4282_v4  ;;  %v4321_v4 = vld [vmem:[#allocation8 + $0x254] ss:$8 sps:$4 sm:$0xff]  }
 0x21f   :  { %2996 = vmatpush1.bf16.msra.mxu0 %v4280_v6  ;;  %v4319_v6 = vld [vmem:[#allocation8 + $0x250] ss:$8 sps:$4 sm:$0xff]  }
 0x220   :  { %2997 = vmatprep.subr.bf16.mxu0 %v4285_v7  ;;  %v486_v7 = vrot.slane %v4719_v33, %v485_v5 }
 0x223   :  { %2998 = vmatpush1.bf16.msra.mxu0 %v4283_v9  ;;  %v4322_v9 = vld [vmem:[#allocation8 + $0x260] ss:$8 sps:$4 sm:$0xff]  }
 0x224   :  { %2999 = vmatprep.subr.bf16.mxu0 %v4288_v10  ;;  %v4327_v10 = vld [vmem:[#allocation8 + $0x274] ss:$8 sps:$4 sm:$0xff]  }
 0x227   :  { %3000 = vmatpush1.bf16.msra.mxu0 %v4286_v48 }
 0x228   :  { %3001 = vmatprep.subr.bf16.mxu0 %v4291_v12 }
 0x22b   :  { %3002 = vmatpush1.bf16.msra.mxu0 %v4289_v13  ;;  %v2311_v13 = vadd.f32 %v4730_v2, %v486_v7  ;;  %v4341_v2 = vld [vmem:[#allocation11 + $0x30] sm:$0xff]  }
 0x22c   :  { %3003 = vmatprep.subr.bf16.mxu0 %v4294_v14 }
 0x22f   :  { %3004 = vmatpush1.bf16.msra.mxu0 %v4292_v15 }
 0x230   :  { %3005 = vmatprep.subr.bf16.mxu0 %v4297_v16  ;;  %v4325_v16 = vld [vmem:[#allocation8 + $0x270] ss:$8 sps:$4 sm:$0xff]  }
 0x233   :  { %3006 = vmatpush1.bf16.msra.mxu0 %v4295_v17 }
 0x234   :  { %3007 = vmatprep.subr.bf16.mxu0 %v4300_v52 }
 0x236   :  { %v3706_v21 = vpop.f32.mrb[8].mxu0 }
 0x237   :  { %3008 = vmatpush1.bf16.msra.mxu0 %v4298_v19  ;;  %v3707_v23 = vpop.f32.mrb[9].mxu0 }
 0x238   :  { %3009 = vmatprep.subr.bf16.mxu0 %v4303_v20  ;;  %v4732_v24 = vadd.f32 %v3707_v23, %v3706_v21  ;;  %v3709_v27 = vpop.f32.mrb[10].mxu0 }
 0x239   :  { %v3710_v28 = vpop.f32.mrb[11].mxu0 }
 0x23a   :  { %v4340_v28 = vld [vmem:[#allocation11 + $0x70] sm:$0xff]  }
 0x23b   :  { %3010 = vmatpush1.bf16.msra.mxu0 %v4301_v22  ;;  %3733 = vmatprep.subr.bf16.mxu1 %v4340_v28 }
 0x23c   :  { %3020 = vmatprep.subr.bf16.mxu0 %v4306_v25  ;;  %3734 = vmatpush3.bf16.msra.mxu1 %v4341_v2 }
 0x23d   :  { %3735 = vmatprep.subr.bf16.mxu1 %v4342_v29 }
 0x240   :  { %3736 = vmatpush3.bf16.msra.mxu1 %v4343_v11 }
 0x274   :  { %v2269_v45 = vpop.f32.mrb[4].mxu1 }
 0x275   :  { %v3767_v46 = vadd.f32 %v2269_v45, %v478_v36  ;;  %v2271_v47 = vpop.f32.mrb[5].mxu1  ;;  %v3629_v45 = vld [vmem:[#allocation13] ss:$0 sm:$0xff] }
 0x276   :  { %v3768_v49 = vadd.f32 %v2271_v47, %v482_v44  ;;  %v2273_v50 = vpop.f32.mrb[6].mxu1 }
 0x277   :  { %v2438_v51 = vmax.f32 %v3767_v46, 0.0  ;;  %v2274_v53 = vpop.f32.mrb[7].mxu1 }
 0x278   :  { %v2439_v54 = vmax.f32 %v3768_v49, 0.0 }
 0x279   :  { %v2443_v58 = vpack.c.bf16 %v2438_v51, %v2438_v51 }
 0x27a   :  { %v2444_v56 = vpack.c.bf16 %v2439_v54, %v2439_v54 }
 0x27c   :  { %3011 = vmatprep.mubr.bf16.mxu0 %v2444_v56 }
 0x27d   :  { %3012 = vmatmul.mubr.bf16.vlgmr.msra.gmra.mrb[12].mxu0 %v2443_v58 }
 0x27e   :  { %3021 = vmatpush1.bf16.msra.mxu0 %v4304_v57  ;;  %3052 = vmatprep.mubr.bf16.mxu0 %v4547_v26  ;;  %v4324_v26 = vld [vmem:[#allocation8 + $0x264] ss:$8 sps:$4 sm:$0xff]  }
 0x27f   :  { %3022 = vmatprep.subr.bf16.mxu0 %v4309_v59 }
 0x282   :  { %3023 = vmatpush1.bf16.msra.mxu0 %v4307_v60 }
 0x283   :  { %3024 = vmatprep.subr.bf16.mxu0 %v4312_v61 }
 0x286   :  { %3025 = vmatpush1.bf16.msra.mxu0 %v4310_v62 }
 0x287   :  { %3026 = vmatprep.subr.bf16.mxu0 %v4315_v63 }
 0x28a   :  { %3027 = vmatpush1.bf16.msra.mxu0 %v4313_v0 }
 0x28b   :  { %3028 = vmatprep.subr.bf16.mxu0 %v4318_v1 }
 0x28e   :  { %3029 = vmatpush1.bf16.msra.mxu0 %v4316_v3 }
 0x28f   :  { %3030 = vmatprep.subr.bf16.mxu0 %v4321_v4 }
 0x292   :  { %3031 = vmatpush1.bf16.msra.mxu0 %v4319_v6 }
 0x293   :  { %3032 = vmatprep.subr.bf16.mxu0 %v4324_v26 }
 0x294   :  { %v3684_v48 = vpop.f32.mrb[8].mxu1 }
 0x295   :  { %v3685_v12 = vpop.f32.mrb[9].mxu1 }
 0x296   :  { %v3686_v14 = vadd.f32 %v3685_v12, %v3684_v48  ;;  %v3687_v15 = vpop.f32.mrb[10].mxu1  ;;  %3033 = vmatpush1.bf16.msra.mxu0 %v4322_v9 }
 0x297   :  { %v3688_v17 = vpop.f32.mrb[11].mxu1  ;;  %3034 = vmatprep.subr.bf16.mxu0 %v4327_v10 }
 0x298   :  { %v2351_v52 = vadd.f32 %v3686_v14, %v2311_v13 }
 0x29a   :  { %v2391_v19 = vadd.f32 %v4732_v24, %v2351_v52  ;;  %3035 = vmatpush1.bf16.msra.mxu0 %v4325_v16  ;;  %v2531_v24 = vrot.slane %v2526_v30, %v469_v32 }
 0x2b4   :  { %v2430_v20 = vpop.f32.mrb[12].mxu1 }
 0x2b5   :  { %v2431_v33 = vadd.f32 %v2430_v20, %v2391_v19  ;;  %v3761_v21 = vpop.f32.mrb[13].mxu1 }
 0x2b6   :  { %v2433_v22 = vpop.f32.mrb[14].mxu1 }
 0x2b7   :  { %v2440_v23 = vmax.f32 %v2431_v33, 0.0  ;;  %v3762_v25 = vpop.f32.mrb[15].mxu1 }
 0x2b9   :  { %v2445_v27 = vpack.c.bf16 %v2440_v23, %v2440_v23 }
 0x2bb   :  { %3053 = vmatmul.mubr.bf16.vlgmr.msra.gmra.mrb[12].mxu0 %v2445_v27 }
 0x38e   :  { %v3054_v37 = vpop.f32.mrb[12].mxu0 }
 0x38f   :  { %v3769_v38 = vadd.f32 %v3054_v37, %v2531_v24  ;;  %v3056_v55 = vpop.f32.mrb[13].mxu0 }
 0x390   :  { %v3770_v39 = vadd.f32 %v3056_v55, %v2535_v35  ;;  %v3058_v8 = vpop.f32.mrb[14].mxu0 }
 0x391   :  { %v3061_v40 = vmax.f32 %v3769_v38, 0.0  ;;  %v3059_v41 = vpop.f32.mrb[15].mxu0 }
 0x392   :  { %v3062_v42 = vmax.f32 %v3770_v39, 0.0 }
 0x393   :  { %v3063_v18 = vpack.c.bf16 %v3061_v40, %v3061_v40 }
 0x394   :  { %v3064_v43 = vpack.c.bf16 %v3062_v42, %v3062_v42 }
 0x396   :  { %3232 = vmatprep.mubr.bf16.mxu1 %v3064_v43 }
 0x397   :  { %3233 = vmatmul.mubr.bf16.vlgmr.msra.gmra.mrb[16].mxu1 %v3063_v18 }
 0x46a   :  { %v3737_v36 = vpop.f32.mrb[16].mxu1 }
 0x46b   :  { %v3738_v44 = vpop.f32.mrb[17].mxu1 }
 0x46c   :  { %v3739_v46 = vadd.f32 %v3738_v44, %v3737_v36  ;;  %v3740_v32 = vpop.f32.mrb[18].mxu1 }
 0x46d   :  { %v3741_v47 = vpop.f32.mrb[19].mxu1 }
 0x46e   :  { %v3235_v31 = vadd.f32 %v3739_v46, %v3629_v45 }
 0x470   :  { %3240 = vmax.xlane.f32.xlu0 %v3235_v31 }
 0x4fd   :  { %v3241_v34 = vpop.xlane.xlu0 %3240 }
 0x4fe   :  { %v3242_v49 = vsub.f32 %v3235_v31, %v3241_v34 }
 0x500   :  { %v3243_v50 = vmul.f32 1.442695, %v3242_v49 }
 0x502   :  { %4344 = vpow2.f32 %v3243_v50 }
 0x50c   :  { %v4345_v51 = vpop.eup %4344 }
 0x50d   :  { %3245 = vadd.xlane.f32.xlu0 %v4345_v51 }
 0x59a   :  { %v3246_v53 = vpop.xlane.xlu0 %3245 }
 0x59b   :  { %4346 = vlog2.f32 %v3246_v53 }
 0x5a5   :  { %v4347_v54 = vpop.eup %4346 }
 0x5a6   :  { %v3248_v56 = vmul.f32 0.6931472, %v4347_v54 }
 0x5a8   :  { %v3249_v57 = vsub.f32 %v3242_v49, %v3248_v56 }
 0x5aa   :  { %3250 = vst [vmem:[#allocation14] sm:$0xff] %v3249_v57 }
 0x5ab   :  { %4513 = shalt.err (!%p4510_p4)
}
 0x5ac   :  { %s4514_s16 = scalar_lea.hbm %s4766_s7, 128 }
 0x5ad   :  { %p4515_p5 = scmp.ne.s32.totalorder %s4766_s7, %s4514_s16  ;;  %p4518_p6 = scmp.lt.u32.totalorder %s4514_s16, %s4766_s7 }
 0x5af   :  { %p4520_p7 = pnand %p4518_p6, %p4515_p5 }
 0x5b1   :  { %4523 = shalt.err (!%p4520_p7)
}
 0x5b2   :  { %3260 = dma.vmem_to_hbm [thread:$0]  %s3258_s14, 128, %s4766_s7, [#allocation4]  }
 0x5b3   :  { %4532 = dma.done.wait [#allocation4], 128  }
 0x5b4   :  { %4533 = vsyncadd [#allocation4], 4294967168 }
 0x5b5   :  { %3264 = vsyncpa [#allocation3], 1 }
 0x5b6   :  { %3265 = vsyncpa [#allocation6], 1 }
 0x5b7   :  { %3266 = vsyncpa [#allocation9], 1 }
 0x5b8   :  { %3267 = vsyncpa [#allocation12], 1 }
 0x5b9   :  { %3268 = vsyncpa [#allocation4], 1 }

</bundles_post_ra>
